<compile_context>
chip_gen: v5e
topology: v5e:2x2
jax: 0.10.0
libtpu: 0.0.40
codegen_flags: <defaults>
</compile_context>

<pallas_src>
import jax
import jax.numpy as jnp
from jax.experimental import pallas as pl
from jax.experimental.pallas import tpu as pltpu

HIDDEN = 768  # fixed by nn.Linear(768, 1) in the module


def _round_up(x, m):
    return ((x + m - 1) // m) * m


def _reward_kernel(cls_ref, wp_ref, bp_ref, wr_ref, br_ref, out_ref):
    """Fused BertPooler + reward head for one batch tile.

    cls_ref : (TILE_B, H) f32   CLS-token hidden states
    wp_ref  : (H, H)      bf16  pooler dense weight (in, out)
    bp_ref  : (1, H)      f32   pooler dense bias
    wr_ref  : (1, H)      f32   reward layer weight as a row vector
    br_ref  : (1, 1)      f32   reward layer bias
    out_ref : (TILE_B, 1) f32   reward score per example
    """
    # pooler: dense + tanh.  bf16 MXU operands, f32 accumulation; tanh (EUP)
    # and everything downstream stays f32.
    cls_bf16 = cls_ref[...].astype(jnp.bfloat16)
    pooled = jnp.tanh(
        jnp.dot(cls_bf16, wp_ref[...], preferred_element_type=jnp.float32)
        + bp_ref[...]
    )

    # reward_layer: Linear(768, 1) -> VPU multiply + lane reduce (no N=1 MXU pass)
    reward = jnp.sum(pooled * wr_ref[...], axis=-1, keepdims=True) + br_ref[...]
    out_ref[...] = reward.astype(out_ref.dtype)


def reward_head_pallas(hidden_state, w_pool, b_pool, w_reward_row, b_reward,
                       tile_b=1024):
    """Fused pooler + reward head.

    hidden_state : (B, S, H) f32 last_hidden_state
    w_pool       : (H, H)    pooler weight, stored (in, out)
    b_pool       : (1, H)
    w_reward_row : (1, H)    reward weight as a row vector
    b_reward     : (1, 1)
    returns      : (B, 1) f32
    """
    B, S, H = hidden_state.shape
    assert H == HIDDEN

    # Free row-major reshape: row b's first H entries of `flat` are exactly
    # hidden_state[b, 0, :] (the CLS token).  The CLS BlockSpec below reads
    # only those 768 lanes per row, so the kernel never touches the other
    # S-1 tokens and no (B, H) slice is materialized in HBM.
    flat = hidden_state.reshape(B, S * H)

    # Batch tile: multiple of 8 (f32 sublane).  Large tiles amortize the
    # ~0.35 us per-grid-step overhead; guarantee >= 2 grid steps whenever B
    # allows it so the "parallel" axis shards across both v7x TensorCores.
    tile_b = min(tile_b, _round_up(B, 8))
    if B > 8 and pl.cdiv(B, tile_b) < 2:
        tile_b = _round_up(pl.cdiv(B, 2), 8)
    tile_b = max(tile_b, 8)
    num_tiles = pl.cdiv(B, tile_b)

    # One-time bf16 cast of the resident pooler weight (halves its DMA bytes
    # and VMEM footprint; MXU runs at native bf16 rate).
    w_pool_bf16 = w_pool.astype(jnp.bfloat16)

    out = pl.pallas_call(
        _reward_kernel,
        out_shape=jax.ShapeDtypeStruct((B, 1), jnp.float32),
        grid=(num_tiles,),
        in_specs=[
            pl.BlockSpec((tile_b, H), lambda i: (i, 0)),   # CLS rows (pipelined)
            pl.BlockSpec((H, H), lambda i: (0, 0)),        # pooler weight (resident)
            pl.BlockSpec((1, H), lambda i: (0, 0)),        # pooler bias
            pl.BlockSpec((1, H), lambda i: (0, 0)),        # reward weight row
            pl.BlockSpec((1, 1), lambda i: (0, 0)),        # reward bias
        ],
        out_specs=pl.BlockSpec((tile_b, 1), lambda i: (i, 0)),
        compiler_params=pltpu.CompilerParams(
            dimension_semantics=("parallel",),
        ),
    )(flat, w_pool_bf16, b_pool, w_reward_row, b_reward)

    return out


def make_params(key, vocab_size=1000, type_vocab_size=2, max_pos=128):
    """Deterministic synthetic parameters (no checkpoint loading)."""
    ks = jax.random.split(key, 7)
    scale = 0.02
    params = {
        # encoder stand-in: embedding tables
        "word_emb": scale * jax.random.normal(ks[0], (vocab_size, HIDDEN), jnp.float32),
        "type_emb": scale * jax.random.normal(ks[1], (type_vocab_size, HIDDEN), jnp.float32),
        "pos_emb": scale * jax.random.normal(ks[2], (max_pos, HIDDEN), jnp.float32),
        # BertPooler: Linear(768, 768), stored as (in, out)
        "w_pool": scale * jax.random.normal(ks[3], (HIDDEN, HIDDEN), jnp.float32),
        "b_pool": scale * jax.random.normal(ks[4], (1, HIDDEN), jnp.float32),
        # reward_layer: Linear(768, 1), stored as a (1, 768) row vector
        "w_reward": scale * jax.random.normal(ks[5], (1, HIDDEN), jnp.float32),
        "b_reward": scale * jax.random.normal(ks[6], (1, 1), jnp.float32),
    }
    return params


def encoder_stub(params, input_ids, token_type_ids, pos_ids):
    """Plain-JAX stand-in for the external ernie-3.0 encoder.

    Returns last_hidden_state of shape (B, S, 768).
    """
    h = (
        params["word_emb"][input_ids]
        + params["type_emb"][token_type_ids]
        + params["pos_emb"][pos_ids]
    )
    return h.astype(jnp.float32)


def reward_model_forward(params, input_ids, token_type_ids,
                         attention_mask=None, pos_ids=None):
    """Mirror of RewardModel.forward: encoder -> pooler -> reward. -> (B, 1)"""
    B, S = input_ids.shape
    if pos_ids is None:
        pos_ids = jnp.broadcast_to(jnp.arange(S, dtype=jnp.int32), (B, S))
    hidden_state = encoder_stub(params, input_ids, token_type_ids, pos_ids)
    return reward_head_pallas(
        hidden_state,
        params["w_pool"], params["b_pool"],
        params["w_reward"], params["b_reward"],
    )


def _reference_forward(params, input_ids, token_type_ids, pos_ids=None):
    """Pure-JAX f32 reference for correctness check."""
    B, S = input_ids.shape
    if pos_ids is None:
        pos_ids = jnp.broadcast_to(jnp.arange(S, dtype=jnp.int32), (B, S))
    h = encoder_stub(params, input_ids, token_type_ids, pos_ids)
    cls = h[:, 0, :]
    pooled = jnp.tanh(cls @ params["w_pool"] + params["b_pool"])
    return pooled @ params["w_reward"].T + params["b_reward"]


if __name__ == "__main__":
    key = jax.random.PRNGKey(0)
    pkey, ikey, tkey = jax.random.split(key, 3)

    params = make_params(pkey)

    # small shapes: batch=2, seq_len=8
    B, S = 2, 8
    input_ids = jax.random.randint(ikey, (B, S), 0, 1000, dtype=jnp.int32)
    token_type_ids = jax.random.randint(tkey, (B, S), 0, 2, dtype=jnp.int32)

    fwd = jax.jit(reward_model_forward)
    reward = fwd(params, input_ids, token_type_ids)
    reward = jax.block_until_ready(reward)

    ref = _reference_forward(params, input_ids, token_type_ids)
    assert reward.shape == (B, 1)
    # bf16 MXU operands (f32 accumulation) -> deliberately loosened tolerance
    # vs. the pure-f32 reference (review: ~1e-2 relative deviation expected).
    assert jnp.allclose(reward, ref, atol=5e-3, rtol=1e-2)

    print("KERNEL_OK")
</pallas_src>

<mosaic_0001>
module attributes {stable_mosaic.version = 11 : i64} {
  func.func @_reward_kernel(%arg0: i32, %arg1: memref<8x768xf32, #tpu.memory_space<vmem>>, %arg2: memref<768x768xbf16, #tpu.memory_space<vmem>>, %arg3: memref<1x768xf32, #tpu.memory_space<vmem>>, %arg4: memref<1x768xf32, #tpu.memory_space<vmem>>, %arg5: memref<1x1xf32, #tpu.memory_space<vmem>>, %arg6: memref<8x1xf32, #tpu.memory_space<vmem>>) attributes {dimension_semantics = [#tpu.dimension_semantics<parallel>], iteration_bounds = array<i64: 1>, scalar_prefetch = 0 : i64, scratch_operands = 0 : i64, tpu.core_type = #tpu.core_type<tc>, window_params = [{transform_indices = @transform_0, window_bounds = array<i64: 8, 768>}, {pipeline_mode = #tpu.pipeline_mode<synchronous>, transform_indices = @transform_1, window_bounds = array<i64: 768, 768>}, {pipeline_mode = #tpu.pipeline_mode<synchronous>, transform_indices = @transform_2, window_bounds = array<i64: 1, 768>}, {pipeline_mode = #tpu.pipeline_mode<synchronous>, transform_indices = @transform_3, window_bounds = array<i64: 1, 768>}, {pipeline_mode = #tpu.pipeline_mode<synchronous>, transform_indices = @transform_4, window_bounds = array<i64: 1, 1>}, {transform_indices = @transform_5, window_bounds = array<i64: 8, 1>}]} {
    %c0 = arith.constant 0 : index
    %c0_0 = arith.constant 0 : index
    %0 = vector.load %arg1[%c0, %c0_0] : memref<8x768xf32, #tpu.memory_space<vmem>>, vector<8x768xf32>
    %1 = arith.truncf %0 : vector<8x768xf32> to vector<8x768xbf16>
    %c0_1 = arith.constant 0 : index
    %c0_2 = arith.constant 0 : index
    %2 = vector.load %arg2[%c0_1, %c0_2] : memref<768x768xbf16, #tpu.memory_space<vmem>>, vector<768x768xbf16>
    %cst = arith.constant dense<0.000000e+00> : vector<8x768xf32>
    %3 = tpu.matmul %1, %2, %cst {dimension_numbers = #tpu.dot_dimension_numbers<[1], [0], [0], [1], [0, 0, 1, 1], [], []>} : vector<8x768xbf16>, vector<768x768xbf16>, vector<8x768xf32> -> vector<8x768xf32>
    %c0_3 = arith.constant 0 : index
    %c0_4 = arith.constant 0 : index
    %4 = vector.load %arg3[%c0_3, %c0_4] : memref<1x768xf32, #tpu.memory_space<vmem>>, vector<1x768xf32>
    %5 = vector.broadcast %4 : vector<1x768xf32> to vector<8x768xf32>
    %6 = arith.addf %3, %5 : vector<8x768xf32>
    %7 = math.tanh %6 : vector<8x768xf32>
    %c0_5 = arith.constant 0 : index
    %c0_6 = arith.constant 0 : index
    %8 = vector.load %arg4[%c0_5, %c0_6] : memref<1x768xf32, #tpu.memory_space<vmem>>, vector<1x768xf32>
    %9 = vector.broadcast %8 : vector<1x768xf32> to vector<8x768xf32>
    %10 = arith.mulf %7, %9 : vector<8x768xf32>
    %cst_7 = arith.constant dense<0.000000e+00> : vector<8xf32>
    %11 = vector.multi_reduction <add>, %10, %cst_7 [1] : vector<8x768xf32> to vector<8xf32>
    %12 = vector.shape_cast %11 : vector<8xf32> to vector<8x1xf32>
    %c0_8 = arith.constant 0 : index
    %c0_9 = arith.constant 0 : index
    %13 = vector.load %arg5[%c0_8, %c0_9] : memref<1x1xf32, #tpu.memory_space<vmem>>, vector<1x1xf32>
    %14 = vector.broadcast %13 : vector<1x1xf32> to vector<8x1xf32>
    %15 = arith.addf %12, %14 : vector<8x1xf32>
    %c0_10 = arith.constant 0 : index
    %c0_11 = arith.constant 0 : index
    %16 = vector.load %arg6[%c0_10, %c0_11] : memref<8x1xf32, #tpu.memory_space<vmem>>, vector<8x1xf32>
    tpu.vector_store %arg6[%c0_10, %c0_11], %15 {strides = array<i32>} : memref<8x1xf32, #tpu.memory_space<vmem>>, vector<8x1xf32>,
    return
  }
  func.func @transform_0(%arg0: i32) -> (i32, i32) {
    %c0_i32 = arith.constant 0 : i32
    %c0_i32_0 = arith.constant 0 : i32
    return %arg0, %c0_i32 : i32, i32
  }
  func.func @transform_1(%arg0: i32) -> (i32, i32) {
    %c0_i32 = arith.constant 0 : i32
    %c0_i32_0 = arith.constant 0 : i32
    %c0_i32_1 = arith.constant 0 : i32
    return %c0_i32, %c0_i32_0 : i32, i32
  }
  func.func @transform_2(%arg0: i32) -> (i32, i32) {
    %c0_i32 = arith.constant 0 : i32
    %c0_i32_0 = arith.constant 0 : i32
    %c0_i32_1 = arith.constant 0 : i32
    return %c0_i32, %c0_i32_0 : i32, i32
  }
  func.func @transform_3(%arg0: i32) -> (i32, i32) {
    %c0_i32 = arith.constant 0 : i32
    %c0_i32_0 = arith.constant 0 : i32
    %c0_i32_1 = arith.constant 0 : i32
    return %c0_i32, %c0_i32_0 : i32, i32
  }
  func.func @transform_4(%arg0: i32) -> (i32, i32) {
    %c0_i32 = arith.constant 0 : i32
    %c0_i32_0 = arith.constant 0 : i32
    %c0_i32_1 = arith.constant 0 : i32
    return %c0_i32, %c0_i32_0 : i32, i32
  }
  func.func @transform_5(%arg0: i32) -> (i32, i32) {
    %c0_i32 = arith.constant 0 : i32
    %c0_i32_0 = arith.constant 0 : i32
    return %arg0, %c0_i32 : i32, i32
  }
}

</mosaic_0001>

<bundles_post_ra>
// kernel: reward_model_forward.1
= control target key start
LH: loop header
LB: loop body
LE: loop exit
PB: predicated region body
PF: predicated region fallthrough
CT: control target
= control target key end

     0   :  { %s5706_s0 = inlined_call_operand.vmem [shape: f32[2,6144], index: 0, kind: input, shape index: {}]   ;;  %s5707_s1 = inlined_call_operand.vmem [shape: bf16[768,768], index: 1, kind: input, shape index: {}]   ;;  %s5708_s2 = inlined_call_operand.vmem [shape: f32[1,768], index: 2, kind: input, shape index: {}]   ;;  %s5709_s3 = inlined_call_operand.vmem [shape: f32[1,768], index: 3, kind: input, shape index: {}]   ;;  %s5710_s4 = inlined_call_operand.<no memory space> [shape: f32[1,1], index: 4, kind: input, shape index: {}]   ;;  %s5711_s5 = inlined_call_operand.vmem [shape: f32[2,1], index: 5, kind: output, shape index: {}]  }
   0x1   :  { %v10_v0 = vstv %s5710_s4 }
   0x2   :  { %11 = vst [vmem:[#allocation2] sm:$0x1] %v10_v0 }
   0x3   :  { %v2572_v1 = vld [vmem:[%s5707_s1 + $0x150] sm:$0xf]  ;;  %v3599_v2 = vld [vmem:[%s5707_s1 + $0x164] sm:$0xf0]  ;;  %v2548_v12 = vld [vmem:[%s5707_s1 + $0x120] sm:$0xf] }
   0x4   :  { %v2764_v3 = vld [vmem:[%s5707_s1 + $0x2d0] sm:$0xf]  ;;  %v2573_v4 = vor.u32 %v3599_v2, %v2572_v1  ;;  %v3647_v5 = vld [vmem:[%s5707_s1 + $0x2e4] sm:$0xf0]  ;;  %v3593_v14 = vld [vmem:[%s5707_s1 + $0x134] sm:$0xf0] }
   0x5   :  { %v2956_v6 = vld [vmem:[%s5707_s1 + $0x450] sm:$0xf]  ;;  %v3695_v7 = vld [vmem:[%s5707_s1 + $0x464] sm:$0xf0]  ;;  %v2765_v8 = vor.u32 %v3647_v5, %v2764_v3  ;;  %v2740_v15 = vld [vmem:[%s5707_s1 + $0x2a0] sm:$0xf]  ;;  %v2549_v17 = vor.u32 %v3593_v14, %v2548_v12 }
   0x6   :  { %v2957_v9 = vor.u32 %v3695_v7, %v2956_v6  ;;  %v3148_v10 = vld [vmem:[%s5707_s1 + $0x5d0] sm:$0xf]  ;;  %v3743_v11 = vld [vmem:[%s5707_s1 + $0x5e4] sm:$0xf0]  ;;  %1844 = vmatpush.bf16.msra.mxu0 %v2573_v4  ;;  %v3641_v16 = vld [vmem:[%s5707_s1 + $0x2b4] sm:$0xf0] }
   0x7   :  { %v3149_v13 = vor.u32 %v3743_v11, %v3148_v10  ;;  %1857 = vmatpush.bf16.msra.mxu1 %v2765_v8  ;;  %v2741_v18 = vor.u32 %v3641_v16, %v2740_v15  ;;  %v2932_v19 = vld [vmem:[%s5707_s1 + $0x420] sm:$0xf]  ;;  %v3689_v20 = vld [vmem:[%s5707_s1 + $0x434] sm:$0xf0]  ;;  %v2524_v24 = vld [vmem:[%s5707_s1 + $0xf0] sm:$0xf] }
   0x8   :  { %1870 = vmatpush.bf16.msra.mxu2 %v2957_v9  ;;  %v3124_v21 = vld [vmem:[%s5707_s1 + $0x5a0] sm:$0xf]  ;;  %v2933_v22 = vor.u32 %v3689_v20, %v2932_v19  ;;  %v3737_v23 = vld [vmem:[%s5707_s1 + $0x5b4] sm:$0xf0]  ;;  %v3587_v25 = vld [vmem:[%s5707_s1 + $0x104] sm:$0xf0] }
   0x9   :  { %1883 = vmatpush.bf16.msra.mxu3 %v3149_v13  ;;  %v3125_v26 = vor.u32 %v3737_v23, %v3124_v21  ;;  %v2716_v27 = vld [vmem:[%s5707_s1 + $0x270] sm:$0xf]  ;;  %v3635_v28 = vld [vmem:[%s5707_s1 + $0x284] sm:$0xf0]  ;;  %v2525_v30 = vor.u32 %v3587_v25, %v2524_v24  ;;  %v2500_v36 = vld [vmem:[%s5707_s1 + $0xc0] sm:$0xf] }
   0xa   :  { %v2908_v29 = vld [vmem:[%s5707_s1 + $0x3f0] sm:$0xf]  ;;  %1845 = vmatpush.bf16.msra.mxu0 %v2549_v17  ;;  %v3683_v31 = vld [vmem:[%s5707_s1 + $0x404] sm:$0xf0]  ;;  %v2717_v34 = vor.u32 %v3635_v28, %v2716_v27  ;;  %v3581_v37 = vld [vmem:[%s5707_s1 + $0xd4] sm:$0xf0] }
   0xb   :  { %v3100_v32 = vld [vmem:[%s5707_s1 + $0x570] sm:$0xf]  ;;  %v3731_v33 = vld [vmem:[%s5707_s1 + $0x584] sm:$0xf0]  ;;  %1858 = vmatpush.bf16.msra.mxu1 %v2741_v18  ;;  %v2909_v35 = vor.u32 %v3683_v31, %v2908_v29  ;;  %v2692_v38 = vld [vmem:[%s5707_s1 + $0x240] sm:$0xf]  ;;  %v2501_v45 = vor.u32 %v3581_v37, %v2500_v36 }
   0xc   :  { %1871 = vmatpush.bf16.msra.mxu2 %v2933_v22  ;;  %v3101_v39 = vor.u32 %v3731_v33, %v3100_v32  ;;  %v3629_v40 = vld [vmem:[%s5707_s1 + $0x254] sm:$0xf0]  ;;  %v2884_v41 = vld [vmem:[%s5707_s1 + $0x3c0] sm:$0xf]  ;;  %v2476_v48 = vld [vmem:[%s5707_s1 + $0x90] sm:$0xf] }
   0xd   :  { %1884 = vmatpush.bf16.msra.mxu3 %v3125_v26  ;;  %v3677_v42 = vld [vmem:[%s5707_s1 + $0x3d4] sm:$0xf0]  ;;  %v3076_v43 = vld [vmem:[%s5707_s1 + $0x540] sm:$0xf]  ;;  %v2693_v46 = vor.u32 %v3629_v40, %v2692_v38  ;;  %v3575_v49 = vld [vmem:[%s5707_s1 + $0xa4] sm:$0xf0] }
   0xe   :  { %v3725_v44 = vld [vmem:[%s5707_s1 + $0x554] sm:$0xf0]  ;;  %1846 = vmatpush.bf16.msra.mxu0 %v2525_v30  ;;  %v2885_v47 = vor.u32 %v3677_v42, %v2884_v41  ;;  %v2668_v50 = vld [vmem:[%s5707_s1 + $0x210] sm:$0xf]  ;;  %v3623_v52 = vld [vmem:[%s5707_s1 + $0x224] sm:$0xf0]  ;;  %v2477_v57 = vor.u32 %v3575_v49, %v2476_v48 }
   0xf   :  { %1859 = vmatpush.bf16.msra.mxu1 %v2717_v34  ;;  %v3077_v51 = vor.u32 %v3725_v44, %v3076_v43  ;;  %v2860_v53 = vld [vmem:[%s5707_s1 + $0x390] sm:$0xf]  ;;  %v3671_v54 = vld [vmem:[%s5707_s1 + $0x3a4] sm:$0xf0]  ;;  %v2669_v58 = vor.u32 %v3623_v52, %v2668_v50  ;;  %v2452_v60 = vld [vmem:[%s5707_s1 + $0x60] sm:$0xf] }
  0x10   :  { %1872 = vmatpush.bf16.msra.mxu2 %v2909_v35  ;;  %v3052_v55 = vld [vmem:[%s5707_s1 + $0x510] sm:$0xf]  ;;  %v3719_v56 = vld [vmem:[%s5707_s1 + $0x524] sm:$0xf0]  ;;  %v2861_v59 = vor.u32 %v3671_v54, %v2860_v53  ;;  %v3569_v61 = vld [vmem:[%s5707_s1 + $0x74] sm:$0xf0] }
  0x11   :  { %1885 = vmatpush.bf16.msra.mxu3 %v3101_v39  ;;  %v2644_v62 = vld [vmem:[%s5707_s1 + $0x1e0] sm:$0xf]  ;;  %v3053_v63 = vor.u32 %v3719_v56, %v3052_v55  ;;  %v3617_v0 = vld [vmem:[%s5707_s1 + $0x1f4] sm:$0xf0]  ;;  %v2453_v5 = vor.u32 %v3569_v61, %v2452_v60  ;;  %v2428_v8 = vld [vmem:[%s5707_s1 + $0x30] sm:$0xf] }
  0x12   :  { %1847 = vmatpush.bf16.msra.mxu0 %v2501_v45  ;;  %v2836_v1 = vld [vmem:[%s5707_s1 + $0x360] sm:$0xf]  ;;  %v3665_v2 = vld [vmem:[%s5707_s1 + $0x374] sm:$0xf0]  ;;  %v2645_v6 = vor.u32 %v3617_v0, %v2644_v62  ;;  %v3563_v9 = vld [vmem:[%s5707_s1 + $0x44] sm:$0xf0] }
  0x13   :  { %1860 = vmatpush.bf16.msra.mxu1 %v2693_v46  ;;  %v3028_v3 = vld [vmem:[%s5707_s1 + $0x4e0] sm:$0xf]  ;;  %v3713_v4 = vld [vmem:[%s5707_s1 + $0x4f4] sm:$0xf0]  ;;  %v2837_v7 = vor.u32 %v3665_v2, %v2836_v1  ;;  %v2620_v10 = vld [vmem:[%s5707_s1 + $0x1b0] sm:$0xf]  ;;  %v2429_v17 = vor.u32 %v3563_v9, %v2428_v8 }
  0x14   :  { %1873 = vmatpush.bf16.msra.mxu2 %v2885_v47  ;;  %v3029_v11 = vor.u32 %v3713_v4, %v3028_v3  ;;  %v3611_v12 = vld [vmem:[%s5707_s1 + $0x1c4] sm:$0xf0]  ;;  %v2812_v13 = vld [vmem:[%s5707_s1 + $0x330] sm:$0xf]  ;;  %v2404_v18 = vld [vmem:[%s5707_s1] sm:$0xf] }
  0x15   :  { %1886 = vmatpush.bf16.msra.mxu3 %v3077_v51  ;;  %v3659_v14 = vld [vmem:[%s5707_s1 + $0x344] sm:$0xf0]  ;;  %v3004_v15 = vld [vmem:[%s5707_s1 + $0x4b0] sm:$0xf]  ;;  %v3557_v19 = vld [vmem:[%s5707_s1 + $0x14] sm:$0xf0]  ;;  %v2621_v20 = vor.u32 %v3611_v12, %v2620_v10 }
  0x16   :  { %1848 = vmatpush.bf16.msra.mxu0 %v2477_v57  ;;  %v3707_v16 = vld [vmem:[%s5707_s1 + $0x4c4] sm:$0xf0]  ;;  %v2813_v21 = vor.u32 %v3659_v14, %v2812_v13  ;;  %v2596_v22 = vld [vmem:[%s5707_s1 + $0x180] sm:$0xf]  ;;  %v3605_v23 = vld [vmem:[%s5707_s1 + $0x194] sm:$0xf0]  ;;  %v2405_v32 = vor.u32 %v3557_v19, %v2404_v18 }
  0x17   :  { %1861 = vmatpush.bf16.msra.mxu1 %v2669_v58  ;;  %v2788_v24 = vld [vmem:[%s5707_s1 + $0x300] sm:$0xf]  ;;  %v3005_v25 = vor.u32 %v3707_v16, %v3004_v15  ;;  %v3653_v26 = vld [vmem:[%s5707_s1 + $0x314] sm:$0xf0]  ;;  %v3340_v29 = vld [vmem:[%s5707_s1 + $0x750] sm:$0xf]  ;;  %v2597_v36 = vor.u32 %v3605_v23, %v2596_v22 }
  0x18   :  { %1874 = vmatpush.bf16.msra.mxu2 %v2861_v59  ;;  %v2980_v27 = vld [vmem:[%s5707_s1 + $0x480] sm:$0xf]  ;;  %v3701_v28 = vld [vmem:[%s5707_s1 + $0x494] sm:$0xf0]  ;;  %v3791_v30 = vld [vmem:[%s5707_s1 + $0x764] sm:$0xf0]  ;;  %v2789_v37 = vor.u32 %v3653_v26, %v2788_v24 }
  0x19   :  { %1887 = vmatpush.bf16.msra.mxu3 %v3053_v63  ;;  %v3532_v31 = vld [vmem:[%s5707_s1 + $0x8d0] sm:$0xf]  ;;  %v3839_v33 = vld [vmem:[%s5707_s1 + $0x8e4] sm:$0xf0]  ;;  %v3596_v34 = vld [vmem:[%s5707_s1 + $0x154] sm:$0xf]  ;;  %v2981_v40 = vor.u32 %v3701_v28, %v2980_v27  ;;  %v3341_v41 = vor.u32 %v3791_v30, %v3340_v29 }
  0x1a   :  { %1849 = vmatpush.bf16.msra.mxu0 %v2453_v5  ;;  %v2574_v35 = vld [vmem:[%s5707_s1 + $0x168] sm:$0xf0]  ;;  %v3644_v38 = vld [vmem:[%s5707_s1 + $0x2d4] sm:$0xf]  ;;  %v3533_v42 = vor.u32 %v3839_v33, %v3532_v31  ;;  %v3316_v44 = vld [vmem:[%s5707_s1 + $0x720] sm:$0xf] }
  0x1b   :  { %1862 = vmatpush.bf16.msra.mxu1 %v2645_v6  ;;  %v2766_v39 = vld [vmem:[%s5707_s1 + $0x2e8] sm:$0xf0]  ;;  %v2577_v43 = vor.u32 %v3596_v34, %v2574_v35  ;;  %v3785_v45 = vld [vmem:[%s5707_s1 + $0x734] sm:$0xf0]  ;;  %v3508_v46 = vld [vmem:[%s5707_s1 + $0x8a0] sm:$0xf] }
  0x1c   :  { %1875 = vmatpush.bf16.msra.mxu2 %v2837_v7  ;;  %v2769_v47 = vor.u32 %v3644_v38, %v2766_v39  ;;  %v3833_v48 = vld [vmem:[%s5707_s1 + $0x8b4] sm:$0xf0]  ;;  %v3590_v49 = vld [vmem:[%s5707_s1 + $0x124] sm:$0xf]  ;;  %v2550_v50 = vld [vmem:[%s5707_s1 + $0x138] sm:$0xf0]  ;;  %v3317_v53 = vor.u32 %v3785_v45, %v3316_v44 }
  0x1d   :  { %1888 = vmatpush.bf16.msra.mxu3 %v3029_v11  ;;  %v3638_v51 = vld [vmem:[%s5707_s1 + $0x2a4] sm:$0xf]  ;;  %v2742_v52 = vld [vmem:[%s5707_s1 + $0x2b8] sm:$0xf0]  ;;  %v3292_v54 = vld [vmem:[%s5707_s1 + $0x6f0] sm:$0xf]  ;;  %v3509_v55 = vor.u32 %v3833_v48, %v3508_v46  ;;  %v2553_v56 = vor.u32 %v3590_v49, %v2550_v50 }
  0x1e   :  { %1850 = vmatpush.bf16.msra.mxu0 %v2429_v17  ;;  %v3779_v57 = vld [vmem:[%s5707_s1 + $0x704] sm:$0xf0]  ;;  %v3484_v58 = vld [vmem:[%s5707_s1 + $0x870] sm:$0xf]  ;;  %v2745_v60 = vor.u32 %v3638_v51, %v2742_v52  ;;  %v3584_v61 = vld [vmem:[%s5707_s1 + $0xf4] sm:$0xf] }
  0x1f   :  { %1863 = vmatpush.bf16.msra.mxu1 %v2621_v20  ;;  %v3827_v59 = vld [vmem:[%s5707_s1 + $0x884] sm:$0xf0]  ;;  %v2526_v62 = vld [vmem:[%s5707_s1 + $0x108] sm:$0xf0]  ;;  %v3632_v63 = vld [vmem:[%s5707_s1 + $0x274] sm:$0xf]  ;;  %v3293_v3 = vor.u32 %v3779_v57, %v3292_v54 }
  0x20   :  { %1876 = vmatpush.bf16.msra.mxu2 %v2813_v21  ;;  %v2718_v0 = vld [vmem:[%s5707_s1 + $0x288] sm:$0xf0]  ;;  %v3268_v1 = vld [vmem:[%s5707_s1 + $0x6c0] sm:$0xf]  ;;  %v3773_v2 = vld [vmem:[%s5707_s1 + $0x6d4] sm:$0xf0]  ;;  %v3485_v7 = vor.u32 %v3827_v59, %v3484_v58  ;;  %v2529_v8 = vor.u32 %v3584_v61, %v2526_v62 }
  0x21   :  { %1889 = vmatpush.bf16.msra.mxu3 %v3005_v25  ;;  %v3460_v4 = vld [vmem:[%s5707_s1 + $0x840] sm:$0xf]  ;;  %v55_v6 = vld [vmem:[#allocation3 + $0xc] sm:$0xff]  ;;  %v3578_v10 = vld [vmem:[%s5707_s1 + $0xc4] sm:$0xf]  ;;  %v2721_v12 = vor.u32 %v3632_v63, %v2718_v0  ;;  %v3269_v17 = vor.u32 %v3773_v2, %v3268_v1  ;;  %vm2350_vm0 = vcmask 7168  }
  0x22   :  { %1851 = vmatpush.bf16.msra.mxu0 %v2405_v32  ;;  %v28_v5 = vld [vmem:[%s5706_s0] sm:$0xff]  ;;  %v3821_v9 = vld [vmem:[%s5707_s1 + $0x854] sm:$0xf0]  ;;  %v2502_v13 = vld [vmem:[%s5707_s1 + $0xd8] sm:$0xf0] }
  0x23   :  { %1864 = vmatpush.bf16.msra.mxu1 %v2597_v36  ;;  %v57_v11 = vld [vmem:[#allocation3 + $0x18] sm:$0xff]  ;;  %v59_v14 = vld [vmem:[#allocation3 + $0x24] sm:$0xff]  ;;  %69 = vst [vmem:[#allocation1] ss:$4 sm:$0xff] %v28_v5  ;;  %v2694_v16 = vld [vmem:[%s5707_s1 + $0x258] sm:$0xf0]  ;;  %v3461_v19 = vor.u32 %v3821_v9, %v3460_v4  ;;  %v2505_v20 = vor.u32 %v3578_v10, %v2502_v13 }
  0x24   :  { %1877 = vmatpush.bf16.msra.mxu2 %v2789_v37  ;;  %v3626_v15 = vld [vmem:[%s5707_s1 + $0x244] sm:$0xf]  ;;  %71 = vst [vmem:[#allocation1 + $0x1] ss:$4 sm:$0xff] %v55_v6  ;;  %v3244_v18 = vld [vmem:[%s5707_s1 + $0x690] sm:$0xf] }
  0x25   :  { %1890 = vmatpush.bf16.msra.mxu3 %v2981_v40  ;;  %73 = vst [vmem:[#allocation1 + $0x2] ss:$4 sm:$0xff] %v57_v11  ;;  %v3767_v21 = vld [vmem:[%s5707_s1 + $0x6a4] sm:$0xf0]  ;;  %v3436_v22 = vld [vmem:[%s5707_s1 + $0x810] sm:$0xf]  ;;  %v2697_v23 = vor.u32 %v3626_v15, %v2694_v16 }
  0x26   :  { %1896 = vmatpush.bf16.msrb.mxu0 %v3341_v41  ;;  %75 = vst [vmem:[#allocation1 + $0x3] ss:$4 sm:$0xff] %v59_v14  ;;  %v3815_v24 = vld [vmem:[%s5707_s1 + $0x824] sm:$0xf0]  ;;  %v3572_v25 = vld [vmem:[%s5707_s1 + $0x94] sm:$0xf]  ;;  %v3245_v29 = vor.u32 %v3767_v21, %v3244_v18 }
  0x27   :  { %1909 = vmatpush.bf16.msrb.mxu1 %v3533_v42  ;;  %v2478_v26 = vld [vmem:[%s5707_s1 + $0xa8] sm:$0xf0]  ;;  %v3620_v27 = vld [vmem:[%s5707_s1 + $0x214] sm:$0xf]  ;;  %v3220_v30 = vld [vmem:[%s5707_s1 + $0x660] sm:$0xf]  ;;  %v3437_v31 = vor.u32 %v3815_v24, %v3436_v22 }
  0x28   :  { %1922 = vmatpush.bf16.msrb.mxu2 %v2577_v43  ;;  %v2670_v28 = vld [vmem:[%s5707_s1 + $0x228] sm:$0xf0]  ;;  %v2481_v32 = vor.u32 %v3572_v25, %v2478_v26  ;;  %v3761_v33 = vld [vmem:[%s5707_s1 + $0x674] sm:$0xf0]  ;;  %v3412_v34 = vld [vmem:[%s5707_s1 + $0x7e0] sm:$0xf] }
  0x29   :  { %1935 = vmatpush.bf16.msrb.mxu3 %v2769_v47  ;;  %v3809_v35 = vld [vmem:[%s5707_s1 + $0x7f4] sm:$0xf0]  ;;  %v2673_v36 = vor.u32 %v3620_v27, %v2670_v28  ;;  %v3566_v37 = vld [vmem:[%s5707_s1 + $0x64] sm:$0xf]  ;;  %v2454_v38 = vld [vmem:[%s5707_s1 + $0x78] sm:$0xf0]  ;;  %v3221_v43 = vor.u32 %v3761_v33, %v3220_v30 }
  0x2a   :  { %1897 = vmatpush.bf16.msrb.mxu0 %v3317_v53  ;;  %v3614_v39 = vld [vmem:[%s5707_s1 + $0x1e4] sm:$0xf]  ;;  %v2646_v40 = vld [vmem:[%s5707_s1 + $0x1f8] sm:$0xf0]  ;;  %v3196_v41 = vld [vmem:[%s5707_s1 + $0x630] sm:$0xf]  ;;  %v3413_v44 = vor.u32 %v3809_v35, %v3412_v34  ;;  %v2457_v49 = vor.u32 %v3566_v37, %v2454_v38 }
  0x2b   :  { %1910 = vmatpush.bf16.msrb.mxu1 %v3509_v55  ;;  %v3755_v42 = vld [vmem:[%s5707_s1 + $0x644] sm:$0xf0]  ;;  %v3388_v47 = vld [vmem:[%s5707_s1 + $0x7b0] sm:$0xf]  ;;  %v2649_v54 = vor.u32 %v3614_v39, %v2646_v40  ;;  %v2430_v57 = vld [vmem:[%s5707_s1 + $0x48] sm:$0xf0] }
  0x2c   :  { %1923 = vmatpush.bf16.msrb.mxu2 %v2553_v56  ;;  %v3803_v48 = vld [vmem:[%s5707_s1 + $0x7c4] sm:$0xf0]  ;;  %v3560_v56 = vld [vmem:[%s5707_s1 + $0x34] sm:$0xf]  ;;  %v3172_v61 = vld [vmem:[%s5707_s1 + $0x600] sm:$0xf]  ;;  %v3197_v63 = vor.u32 %v3755_v42, %v3196_v41 }
  0x2d   :  { %1936 = vmatpush.bf16.msrb.mxu3 %v2745_v60  ;;  %v86_v45 = vld.sshfl [vmem:[#allocation1 + $0x10] sm:$0xff pattern:$0x73625140]  ;;  %v84_v46 = vld.sshfl [vmem:[#allocation1] sm:$0xff pattern:$0x73625140]  ;;  %v3389_v4 = vor.u32 %v3803_v48, %v3388_v47  ;;  %v2433_v5 = vor.u32 %v3560_v56, %v2430_v57 }
  0x2e   :  { %1898 = vmatpush.bf16.msrb.mxu0 %v3293_v3  ;;  %v4240_v50 = vpack.c.bf16 %v86_v45, %v86_v45  ;;  %v4242_v51 = vpack.c.bf16 %v84_v46, %v84_v46  ;;  %v87_v52 = vld.sshfl [vmem:[#allocation1 + $0x18] sm:$0xff pattern:$0x73625140]  ;;  %v85_v53 = vld.sshfl [vmem:[#allocation1 + $0x8] sm:$0xff pattern:$0x73625140] }
  0x2f   :  { %1911 = vmatpush.bf16.msrb.mxu1 %v3485_v7  ;;  %v4244_v55 = vpack.c.bf16 %v87_v52, %v87_v52  ;;  %v3608_v58 = vld [vmem:[%s5707_s1 + $0x1b4] sm:$0xf]  ;;  %v4255_v59 = vpack.c.bf16 %v85_v53, %v85_v53  ;;  %v2622_v60 = vld [vmem:[%s5707_s1 + $0x1c8] sm:$0xf0]  ;;  %v3749_v62 = vld [vmem:[%s5707_s1 + $0x614] sm:$0xf0] }
  0x30   :  { %1924 = vmatpush.bf16.msrb.mxu2 %v2529_v8  ;;  %1852 = vmatmul.bf16.vlgmr.msra.gmra.mxu0 %v4242_v51  ;;  %v3364_v0 = vld [vmem:[%s5707_s1 + $0x780] sm:$0xf]  ;;  %v3797_v1 = vld [vmem:[%s5707_s1 + $0x794] sm:$0xf0]  ;;  %v3554_v2 = vld [vmem:[%s5707_s1 + $0x4] sm:$0xf]  ;;  %v2625_v10 = vor.u32 %v3608_v58, %v2622_v60 }
  0x31   :  { %1937 = vmatpush.bf16.msrb.mxu3 %v2721_v12  ;;  %1878 = vmatmul.bf16.vlgmr.msra.gmra.mxu2 %v4240_v50  ;;  %v2406_v3 = vld [vmem:[%s5707_s1 + $0x18] sm:$0xf0]  ;;  %v3602_v6 = vld [vmem:[%s5707_s1 + $0x184] sm:$0xf]  ;;  %v3692_v8 = vld [vmem:[%s5707_s1 + $0x454] sm:$0xf] }
  0x32   :  { %1899 = vmatpush.bf16.msrb.mxu0 %v3269_v17  ;;  %1891 = vmatmul.bf16.vlgmr.msra.gmra.mxu3 %v4244_v55  ;;  %v2598_v7 = vld [vmem:[%s5707_s1 + $0x198] sm:$0xf0]  ;;  %v2958_v9 = vld [vmem:[%s5707_s1 + $0x468] sm:$0xf0]  ;;  %v3740_v11 = vld [vmem:[%s5707_s1 + $0x5d4] sm:$0xf]  ;;  %v3173_v17 = vor.u32 %v3749_v62, %v3172_v61  ;;  %v2409_v21 = vor.u32 %v3554_v2, %v2406_v3 }
  0x33   :  { %1912 = vmatpush.bf16.msrb.mxu1 %v3461_v19  ;;  %v3150_v12 = vld [vmem:[%s5707_s1 + $0x5e8] sm:$0xf0]  ;;  %v2401_v13 = vld [vmem:[%s5706_s0 + $0x8] sm:$0xf]  ;;  %v56_v14 = vld [vmem:[#allocation3 + $0x14] sm:$0xf]  ;;  %v2601_v24 = vor.u32 %v3602_v6, %v2598_v7  ;;  %v2961_v25 = vor.u32 %v3692_v8, %v2958_v9 }
  0x34   :  { %1925 = vmatpush.bf16.msrb.mxu2 %v2505_v20  ;;  %1865 = vmatmul.bf16.vlgmr.msra.gmra.mxu1 %v4255_v59  ;;  %41 = vst [vmem:[#allocation3 + $0x8] sm:$0xf] %v2401_v13  ;;  %v58_v15 = vld [vmem:[#allocation3 + $0x20] sm:$0xf]  ;;  %v60_v16 = vld [vmem:[#allocation3 + $0x2c] sm:$0xf]  ;;  %v3365_v20 = vor.u32 %v3797_v1, %v3364_v0  ;;  %v3153_v26 = vor.u32 %v3740_v11, %v3150_v12 }
  0x35   :  { %1938 = vmatpush.bf16.msrb.mxu3 %v2697_v23  ;;  %v3788_v18 = vld [vmem:[%s5707_s1 + $0x754] sm:$0xf]  ;;  %v3342_v19 = vld [vmem:[%s5707_s1 + $0x768] sm:$0xf0]  ;;  %79 = vst [vmem:[#allocation1 + $0x21] ss:$4 sm:$0xff] %v56_v14 }
  0x36   :  { %1900 = vmatpush.bf16.msrb.mxu0 %v3245_v29  ;;  %v3836_v22 = vld [vmem:[%s5707_s1 + $0x8d4] sm:$0xf]  ;;  %v3534_v23 = vld [vmem:[%s5707_s1 + $0x8e8] sm:$0xf0]  ;;  %81 = vst [vmem:[#allocation1 + $0x22] ss:$4 sm:$0xff] %v58_v15  ;;  %v3345_v27 = vor.u32 %v3788_v18, %v3342_v19 }
  0x37   :  { %1913 = vmatpush.bf16.msrb.mxu1 %v3437_v31  ;;  %83 = vst [vmem:[#allocation1 + $0x23] ss:$4 sm:$0xff] %v60_v16  ;;  %v3686_v28 = vld [vmem:[%s5707_s1 + $0x424] sm:$0xf]  ;;  %v2934_v29 = vld [vmem:[%s5707_s1 + $0x438] sm:$0xf0]  ;;  %v3537_v31 = vor.u32 %v3836_v22, %v3534_v23 }
  0x38   :  { %1926 = vmatpush.bf16.msrb.mxu2 %v2481_v32  ;;  %v3734_v30 = vld [vmem:[%s5707_s1 + $0x5a4] sm:$0xf]  ;;  %v3126_v32 = vld [vmem:[%s5707_s1 + $0x5b8] sm:$0xf0]  ;;  %v2937_v37 = vor.u32 %v3686_v28, %v2934_v29  ;;  %v3680_v38 = vld [vmem:[%s5707_s1 + $0x3f4] sm:$0xf] }
  0x39   :  { %1939 = vmatpush.bf16.msrb.mxu3 %v2673_v36  ;;  %v3782_v33 = vld [vmem:[%s5707_s1 + $0x724] sm:$0xf]  ;;  %v3318_v34 = vld [vmem:[%s5707_s1 + $0x738] sm:$0xf0]  ;;  %v3129_v40 = vor.u32 %v3734_v30, %v3126_v32  ;;  %v2910_v42 = vld [vmem:[%s5707_s1 + $0x408] sm:$0xf0] }
  0x3a   :  { %1901 = vmatpush.bf16.msrb.mxu0 %v3221_v43  ;;  %v3830_v35 = vld [vmem:[%s5707_s1 + $0x8a4] sm:$0xf]  ;;  %v3510_v36 = vld [vmem:[%s5707_s1 + $0x8b8] sm:$0xf0]  ;;  %v3321_v41 = vor.u32 %v3782_v33, %v3318_v34  ;;  %v3728_v43 = vld [vmem:[%s5707_s1 + $0x574] sm:$0xf]  ;;  %v2913_v52 = vor.u32 %v3680_v38, %v2910_v42 }
  0x3b   :  { %1914 = vmatpush.bf16.msrb.mxu1 %v3413_v44  ;;  %v54_v39 = vld [vmem:[#allocation3 + $0x8] sm:$0xf]  ;;  %v3513_v44 = vor.u32 %v3830_v35, %v3510_v36  ;;  %v3102_v45 = vld [vmem:[%s5707_s1 + $0x588] sm:$0xf0]  ;;  %v3674_v53 = vld [vmem:[%s5707_s1 + $0x3c4] sm:$0xf] }
  0x3c   :  { %1927 = vmatpush.bf16.msrb.mxu2 %v2457_v49  ;;  %77 = vst [vmem:[#allocation1 + $0x20] ss:$4 sm:$0xff] %v54_v39  ;;  %v3776_v46 = vld [vmem:[%s5707_s1 + $0x6f4] sm:$0xf]  ;;  %v3294_v47 = vld [vmem:[%s5707_s1 + $0x708] sm:$0xf0] }
  0x3d   :  { %1940 = vmatpush.bf16.msrb.mxu3 %v2649_v54  ;;  %v3824_v48 = vld [vmem:[%s5707_s1 + $0x874] sm:$0xf]  ;;  %v3486_v49 = vld [vmem:[%s5707_s1 + $0x888] sm:$0xf0]  ;;  %v3105_v54 = vor.u32 %v3728_v43, %v3102_v45  ;;  %v3297_v56 = vor.u32 %v3776_v46, %v3294_v47  ;;  %v2886_v57 = vld [vmem:[%s5707_s1 + $0x3d8] sm:$0xf0] }
  0x3e   :  { %1902 = vmatpush.bf16.msrb.mxu0 %v3197_v63  ;;  %v3722_v58 = vld [vmem:[%s5707_s1 + $0x544] sm:$0xf]  ;;  %v3078_v60 = vld [vmem:[%s5707_s1 + $0x558] sm:$0xf0]  ;;  %v3489_v61 = vor.u32 %v3824_v48, %v3486_v49  ;;  %v3668_v9 = vld [vmem:[%s5707_s1 + $0x394] sm:$0xf] }
  0x3f   :  { %1915 = vmatpush.bf16.msrb.mxu1 %v3389_v4  ;;  %v3770_v62 = vld [vmem:[%s5707_s1 + $0x6c4] sm:$0xf]  ;;  %v3270_v63 = vld [vmem:[%s5707_s1 + $0x6d8] sm:$0xf0]  ;;  %v2889_v4 = vor.u32 %v3674_v53, %v2886_v57  ;;  %v3716_v11 = vld [vmem:[%s5707_s1 + $0x514] sm:$0xf] }
  0x40   :  { %1928 = vmatpush.bf16.msrb.mxu2 %v2433_v5  ;;  %v3818_v0 = vld [vmem:[%s5707_s1 + $0x844] sm:$0xf]  ;;  %v3462_v1 = vld [vmem:[%s5707_s1 + $0x858] sm:$0xf0]  ;;  %v3081_v5 = vor.u32 %v3722_v58, %v3078_v60  ;;  %v3273_v8 = vor.u32 %v3770_v62, %v3270_v63  ;;  %v3054_v13 = vld [vmem:[%s5707_s1 + $0x528] sm:$0xf0] }
  0x41   :  { %1941 = vmatpush.bf16.msrb.mxu3 %v2625_v10  ;;  %v2862_v10 = vld [vmem:[%s5707_s1 + $0x3a8] sm:$0xf0]  ;;  %v3465_v12 = vor.u32 %v3818_v0, %v3462_v1  ;;  %v3764_v14 = vld [vmem:[%s5707_s1 + $0x694] sm:$0xf]  ;;  %v3057_v19 = vor.u32 %v3716_v11, %v3054_v13  ;;  %v2838_v22 = vld [vmem:[%s5707_s1 + $0x378] sm:$0xf0] }
  0x42   :  { %1903 = vmatpush.bf16.msrb.mxu0 %v3173_v17  ;;  %v3246_v15 = vld [vmem:[%s5707_s1 + $0x6a8] sm:$0xf0]  ;;  %v3812_v16 = vld [vmem:[%s5707_s1 + $0x814] sm:$0xf]  ;;  %v2865_v18 = vor.u32 %v3668_v9, %v2862_v10  ;;  %v3710_v23 = vld [vmem:[%s5707_s1 + $0x4e4] sm:$0xf] }
  0x43   :  { %1916 = vmatpush.bf16.msrb.mxu1 %v3365_v20  ;;  %v88_v2 = vld.sshfl [vmem:[#allocation1 + $0x20] sm:$0xff pattern:$0x73625140]  ;;  %v89_v3 = vld.sshfl [vmem:[#allocation1 + $0x28] sm:$0xff pattern:$0x73625140]  ;;  %v3249_v20 = vor.u32 %v3764_v14, %v3246_v15 }
  0x44   :  { %1929 = vmatpush.bf16.msrb.mxu2 %v2409_v21  ;;  %v4389_v6 = vpack.c.bf16 %v88_v2, %v88_v2  ;;  %v4391_v7 = vpack.c.bf16 %v89_v3, %v89_v3  ;;  %v3438_v17 = vld [vmem:[%s5707_s1 + $0x828] sm:$0xf0]  ;;  %v3662_v21 = vld [vmem:[%s5707_s1 + $0x364] sm:$0xf]  ;;  %v3414_v29 = vld [vmem:[%s5707_s1 + $0x7f8] sm:$0xf0] }
  0x45   :  { %1942 = vmatpush.bf16.msrb.mxu3 %v2601_v24  ;;  %v3441_v24 = vor.u32 %v3812_v16, %v3438_v17  ;;  %v3806_v28 = vld [vmem:[%s5707_s1 + $0x7e4] sm:$0xf]  ;;  %v2841_v30 = vor.u32 %v3662_v21, %v2838_v22  ;;  %v3656_v33 = vld [vmem:[%s5707_s1 + $0x334] sm:$0xf]  ;;  %v2814_v34 = vld [vmem:[%s5707_s1 + $0x348] sm:$0xf0] }
  0x46   :  { %1948 = vmatpush.bf16.msra.mxu0 %v2961_v25  ;;  %1917 = vmatmul.bf16.vlgmr.msrb.gmra.mxu1 %v4391_v7  ;;  %v3030_v25 = vld [vmem:[%s5707_s1 + $0x4f8] sm:$0xf0]  ;;  %v3704_v35 = vld [vmem:[%s5707_s1 + $0x4b4] sm:$0xf]  ;;  %v3417_v36 = vor.u32 %v3806_v28, %v3414_v29  ;;  %v3198_v39 = vld [vmem:[%s5707_s1 + $0x648] sm:$0xf0]  ;;  %v2817_v42 = vor.u32 %v3656_v33, %v2814_v34 }
  0x47   :  { %1961 = vmatpush.bf16.msra.mxu1 %v3153_v26  ;;  %1930 = vmatmul.bf16.vlgmr.msrb.gmra.mxu2 %v4242_v51  ;;  %v3758_v26 = vld [vmem:[%s5707_s1 + $0x664] sm:$0xf]  ;;  %v3752_v38 = vld [vmem:[%s5707_s1 + $0x634] sm:$0xf]  ;;  %v2982_v48 = vld [vmem:[%s5707_s1 + $0x498] sm:$0xf0] }
  0x48   :  { %1974 = vmatpush.bf16.msra.mxu2 %v3345_v27  ;;  %1943 = vmatmul.bf16.vlgmr.msrb.gmra.mxu3 %v4255_v59  ;;  %v3222_v27 = vld [vmem:[%s5707_s1 + $0x678] sm:$0xf0]  ;;  %v3650_v43 = vld [vmem:[%s5707_s1 + $0x304] sm:$0xf]  ;;  %v3201_v46 = vor.u32 %v3752_v38, %v3198_v39  ;;  %v2580_v57 = vld [vmem:[%s5707_s1 + $0x158] sm:$0xf] }
  0x49   :  { %1987 = vmatpush.bf16.msra.mxu3 %v3537_v31  ;;  %1904 = vmatmul.bf16.vlgmr.msrb.gmra.mxu0 %v4389_v6  ;;  %v3033_v31 = vor.u32 %v3710_v23, %v3030_v25  ;;  %v3225_v32 = vor.u32 %v3758_v26, %v3222_v27  ;;  %v3698_v47 = vld [vmem:[%s5707_s1 + $0x484] sm:$0xf]  ;;  %v3174_v53 = vld [vmem:[%s5707_s1 + $0x618] sm:$0xf0]  ;;  %v3600_v58 = vld [vmem:[%s5707_s1 + $0x16c] sm:$0xf0] }
  0x4a   :  { %1949 = vmatpush.bf16.msra.mxu0 %v2937_v37  ;;  %v3006_v37 = vld [vmem:[%s5707_s1 + $0x4c8] sm:$0xf0]  ;;  %v3746_v49 = vld [vmem:[%s5707_s1 + $0x604] sm:$0xf]  ;;  %v2772_v60 = vld [vmem:[%s5707_s1 + $0x2d8] sm:$0xf]  ;;  %v2985_v1 = vor.u32 %v3698_v47, %v2982_v48 }
  0x4b   :  { %1962 = vmatpush.bf16.msra.mxu1 %v3129_v40  ;;  %v3800_v40 = vld [vmem:[%s5707_s1 + $0x7b4] sm:$0xf]  ;;  %v3009_v45 = vor.u32 %v3704_v35, %v3006_v37  ;;  %v3648_v62 = vld [vmem:[%s5707_s1 + $0x2ec] sm:$0xf0]  ;;  %v2964_v63 = vld [vmem:[%s5707_s1 + $0x458] sm:$0xf]  ;;  %v3177_v2 = vor.u32 %v3746_v49, %v3174_v53 }
  0x4c   :  { %1975 = vmatpush.bf16.msra.mxu2 %v3321_v41  ;;  %v3390_v41 = vld [vmem:[%s5707_s1 + $0x7c8] sm:$0xf0]  ;;  %v3696_v0 = vld [vmem:[%s5707_s1 + $0x46c] sm:$0xf0]  ;;  %v3156_v3 = vld [vmem:[%s5707_s1 + $0x5d8] sm:$0xf]  ;;  %v2773_v9 = vor.u32 %v3648_v62, %v2772_v60 }
  0x4d   :  { %1988 = vmatpush.bf16.msra.mxu3 %v3513_v44  ;;  %v2790_v44 = vld [vmem:[%s5707_s1 + $0x318] sm:$0xf0]  ;;  %v2965_v10 = vor.u32 %v3696_v0, %v2964_v63  ;;  %v2556_v11 = vld [vmem:[%s5707_s1 + $0x128] sm:$0xf]  ;;  %v3642_v15 = vld [vmem:[%s5707_s1 + $0x2bc] sm:$0xf0] }
  0x4e   :  { %1950 = vmatpush.bf16.msra.mxu0 %v2913_v52  ;;  %v3393_v52 = vor.u32 %v3800_v40, %v3390_v41  ;;  %v2748_v13 = vld [vmem:[%s5707_s1 + $0x2a8] sm:$0xf]  ;;  %v3690_v17 = vld [vmem:[%s5707_s1 + $0x43c] sm:$0xf0]  ;;  %v2532_v23 = vld [vmem:[%s5707_s1 + $0xf8] sm:$0xf] }
  0x4f   :  { %1963 = vmatpush.bf16.msra.mxu1 %v3105_v54  ;;  %v3794_v54 = vld [vmem:[%s5707_s1 + $0x784] sm:$0xf]  ;;  %v2940_v16 = vld [vmem:[%s5707_s1 + $0x428] sm:$0xf]  ;;  %v2749_v21 = vor.u32 %v3642_v15, %v2748_v13  ;;  %v2724_v25 = vld [vmem:[%s5707_s1 + $0x278] sm:$0xf] }
  0x50   :  { %1976 = vmatpush.bf16.msra.mxu2 %v3297_v56  ;;  %v3366_v56 = vld [vmem:[%s5707_s1 + $0x798] sm:$0xf0]  ;;  %v2941_v22 = vor.u32 %v3690_v17, %v2940_v16  ;;  %v3636_v27 = vld [vmem:[%s5707_s1 + $0x28c] sm:$0xf0]  ;;  %v2916_v28 = vld [vmem:[%s5707_s1 + $0x3f8] sm:$0xf] }
  0x51   :  { %1989 = vmatpush.bf16.msra.mxu3 %v3489_v61  ;;  %v2793_v61 = vor.u32 %v3650_v43, %v2790_v44  ;;  %v3684_v29 = vld [vmem:[%s5707_s1 + $0x40c] sm:$0xf0]  ;;  %v2725_v33 = vor.u32 %v3636_v27, %v2724_v25  ;;  %v2508_v35 = vld [vmem:[%s5707_s1 + $0xc8] sm:$0xf]  ;;  %v3630_v39 = vld [vmem:[%s5707_s1 + $0x25c] sm:$0xf0] }
  0x52   :  { %1951 = vmatpush.bf16.msra.mxu0 %v2889_v4  ;;  %v3744_v4 = vld [vmem:[%s5707_s1 + $0x5ec] sm:$0xf0]  ;;  %v2917_v34 = vor.u32 %v3684_v29, %v2916_v28  ;;  %v2700_v37 = vld [vmem:[%s5707_s1 + $0x248] sm:$0xf]  ;;  %v3678_v41 = vld [vmem:[%s5707_s1 + $0x3dc] sm:$0xf0] }
  0x53   :  { %1964 = vmatpush.bf16.msra.mxu1 %v3081_v5  ;;  %v3369_v5 = vor.u32 %v3794_v54, %v3366_v56  ;;  %v3157_v14 = vor.u32 %v3744_v4, %v3156_v3  ;;  %v2892_v40 = vld [vmem:[%s5707_s1 + $0x3c8] sm:$0xf]  ;;  %v3726_v43 = vld [vmem:[%s5707_s1 + $0x55c] sm:$0xf0]  ;;  %v2484_v47 = vld [vmem:[%s5707_s1 + $0x98] sm:$0xf] }
  0x54   :  { %1977 = vmatpush.bf16.msra.mxu2 %v3273_v8  ;;  %v2581_v8 = vor.u32 %v3600_v58, %v2580_v57  ;;  %v3576_v48 = vld [vmem:[%s5707_s1 + $0xac] sm:$0xf0]  ;;  %v2676_v49 = vld [vmem:[%s5707_s1 + $0x218] sm:$0xf]  ;;  %v2460_v63 = vld [vmem:[%s5707_s1 + $0x68] sm:$0xf] }
  0x55   :  { %1990 = vmatpush.bf16.msra.mxu3 %v3465_v12  ;;  %v3594_v12 = vld [vmem:[%s5707_s1 + $0x13c] sm:$0xf0]  ;;  %v3624_v53 = vld [vmem:[%s5707_s1 + $0x22c] sm:$0xf0]  ;;  %v2868_v54 = vld [vmem:[%s5707_s1 + $0x398] sm:$0xf]  ;;  %v2485_v60 = vor.u32 %v3576_v48, %v2484_v47 }
  0x56   :  { %1952 = vmatpush.bf16.msra.mxu0 %v2865_v18  ;;  %v3132_v18 = vld [vmem:[%s5707_s1 + $0x5a8] sm:$0xf]  ;;  %v3672_v56 = vld [vmem:[%s5707_s1 + $0x3ac] sm:$0xf0]  ;;  %v3060_v57 = vld [vmem:[%s5707_s1 + $0x518] sm:$0xf] }
  0x57   :  { %1965 = vmatpush.bf16.msra.mxu1 %v3057_v19  ;;  %v3738_v19 = vld [vmem:[%s5707_s1 + $0x5bc] sm:$0xf0]  ;;  %v3720_v58 = vld [vmem:[%s5707_s1 + $0x52c] sm:$0xf0]  ;;  %v2869_v62 = vor.u32 %v3672_v56, %v2868_v54  ;;  %v2844_v4 = vld [vmem:[%s5707_s1 + $0x368] sm:$0xf] }
  0x58   :  { %1978 = vmatpush.bf16.msra.mxu2 %v3249_v20  ;;  %v2557_v20 = vor.u32 %v3594_v12, %v2556_v11  ;;  %v3133_v26 = vor.u32 %v3738_v19, %v3132_v18  ;;  %v3570_v0 = vld [vmem:[%s5707_s1 + $0x7c] sm:$0xf0]  ;;  %v2436_v13 = vld [vmem:[%s5707_s1 + $0x38] sm:$0xf]  ;;  %v3612_v17 = vld [vmem:[%s5707_s1 + $0x1cc] sm:$0xf0] }
  0x59   :  { %1991 = vmatpush.bf16.msra.mxu3 %v3441_v24  ;;  %v3588_v24 = vld [vmem:[%s5707_s1 + $0x10c] sm:$0xf0]  ;;  %v3618_v3 = vld [vmem:[%s5707_s1 + $0x1fc] sm:$0xf0]  ;;  %v2628_v15 = vld [vmem:[%s5707_s1 + $0x1b8] sm:$0xf] }
  0x5a   :  { %1953 = vmatpush.bf16.msra.mxu0 %v2841_v30  ;;  %v3108_v30 = vld [vmem:[%s5707_s1 + $0x578] sm:$0xf]  ;;  %v3660_v19 = vld [vmem:[%s5707_s1 + $0x34c] sm:$0xf0]  ;;  %v2629_v25 = vor.u32 %v3612_v17, %v2628_v15  ;;  %v2604_v27 = vld [vmem:[%s5707_s1 + $0x188] sm:$0xf] }
  0x5b   :  { %1966 = vmatpush.bf16.msra.mxu1 %v3033_v31  ;;  %v3732_v31 = vld [vmem:[%s5707_s1 + $0x58c] sm:$0xf0]  ;;  %v2820_v18 = vld [vmem:[%s5707_s1 + $0x338] sm:$0xf]  ;;  %v3606_v28 = vld [vmem:[%s5707_s1 + $0x19c] sm:$0xf0] }
  0x5c   :  { %1979 = vmatpush.bf16.msra.mxu2 %v3225_v32  ;;  %v2533_v32 = vor.u32 %v3588_v24, %v2532_v23  ;;  %v3109_v38 = vor.u32 %v3732_v31, %v3108_v30  ;;  %v2412_v23 = vld [vmem:[%s5707_s1 + $0x8] sm:$0xf]  ;;  %v3558_v24 = vld [vmem:[%s5707_s1 + $0x1c] sm:$0xf0] }
  0x5d   :  { %1992 = vmatpush.bf16.msra.mxu3 %v3417_v36  ;;  %v3582_v36 = vld [vmem:[%s5707_s1 + $0xdc] sm:$0xf0]  ;;  %v2796_v29 = vld [vmem:[%s5707_s1 + $0x308] sm:$0xf] }
  0x5e   :  { %1954 = vmatpush.bf16.msra.mxu0 %v2817_v42  ;;  %v3084_v42 = vld [vmem:[%s5707_s1 + $0x548] sm:$0xf]  ;;  %v2509_v44 = vor.u32 %v3582_v36, %v2508_v35  ;;  %v3654_v31 = vld [vmem:[%s5707_s1 + $0x31c] sm:$0xf0]  ;;  %v3792_v35 = vld [vmem:[%s5707_s1 + $0x76c] sm:$0xf0] }
  0x5f   :  { %1967 = vmatpush.bf16.msra.mxu1 %v3009_v45  ;;  %v2701_v45 = vor.u32 %v3630_v39, %v2700_v37  ;;  %v3540_v36 = vld [vmem:[%s5707_s1 + $0x8d8] sm:$0xf]  ;;  %v2413_v37 = vor.u32 %v3558_v24, %v2412_v23  ;;  %v3597_v39 = vld [vmem:[%s5707_s1 + $0x15c] sm:$0xf]  ;;  %v3834_v56 = vld [vmem:[%s5707_s1 + $0x8bc] sm:$0xf0] }
  0x60   :  { %1980 = vmatpush.bf16.msra.mxu2 %v3201_v46  ;;  %v2893_v46 = vor.u32 %v3678_v41, %v2892_v40  ;;  %v2582_v40 = vld [vmem:[%s5707_s1 + $0x170] sm:$0xf0]  ;;  %v2605_v41 = vor.u32 %v3606_v28, %v2604_v27  ;;  %v3276_v15 = vld [vmem:[%s5707_s1 + $0x6c8] sm:$0xf]  ;;  %v2702_v23 = vld [vmem:[%s5707_s1 + $0x260] sm:$0xf0] }
  0x61   :  { %1993 = vmatpush.bf16.msra.mxu3 %v3393_v52  ;;  %v3085_v52 = vor.u32 %v3726_v43, %v3084_v42  ;;  %v2797_v42 = vor.u32 %v3654_v31, %v2796_v29  ;;  %v3645_v43 = vld [vmem:[%s5707_s1 + $0x2dc] sm:$0xf]  ;;  %v2585_v48 = vor.u32 %v3597_v39, %v2582_v40  ;;  %v3468_v17 = vld [vmem:[%s5707_s1 + $0x848] sm:$0xf]  ;;  %v3252_v27 = vld [vmem:[%s5707_s1 + $0x698] sm:$0xf] }
  0x62   :  { %1955 = vmatpush.bf16.msra.mxu0 %v2793_v61  ;;  %v2677_v61 = vor.u32 %v3624_v53, %v2676_v49  ;;  %v3324_v49 = vld [vmem:[%s5707_s1 + $0x728] sm:$0xf]  ;;  %v3768_v28 = vld [vmem:[%s5707_s1 + $0x6ac] sm:$0xf0]  ;;  %v3444_v29 = vld [vmem:[%s5707_s1 + $0x818] sm:$0xf] }
  0x63   :  { %1968 = vmatpush.bf16.msra.mxu1 %v2985_v1  ;;  %v2652_v1 = vld [vmem:[%s5707_s1 + $0x1e8] sm:$0xf]  ;;  %v3816_v31 = vld [vmem:[%s5707_s1 + $0x82c] sm:$0xf0]  ;;  %v3762_v40 = vld [vmem:[%s5707_s1 + $0x67c] sm:$0xf0] }
  0x64   :  { %1981 = vmatpush.bf16.msra.mxu2 %v3177_v2  ;;  %v3061_v2 = vor.u32 %v3720_v58, %v3060_v57  ;;  %v2653_v11 = vor.u32 %v3618_v3, %v2652_v1  ;;  %v3516_v53 = vld [vmem:[%s5707_s1 + $0x8a8] sm:$0xf]  ;;  %v3591_v57 = vld [vmem:[%s5707_s1 + $0x12c] sm:$0xf]  ;;  %v2558_v58 = vld [vmem:[%s5707_s1 + $0x140] sm:$0xf0] }
  0x65   :  { %1994 = vmatpush.bf16.msra.mxu3 %v3369_v5  ;;  %1956 = vmatmul.bf16.vlgmr.msra.gmra.mxu0 %v4240_v50  ;;  %v3666_v5 = vld [vmem:[%s5707_s1 + $0x37c] sm:$0xf0]  ;;  %v3300_v1 = vld [vmem:[%s5707_s1 + $0x6f8] sm:$0xf]  ;;  %v3228_v39 = vld [vmem:[%s5707_s1 + $0x668] sm:$0xf] }
  0x66   :  { %2000 = vmatpush.bf16.msrb.mxu0 %v2581_v8  ;;  %1969 = vmatmul.bf16.vlgmr.msra.gmra.mxu1 %v4244_v55  ;;  %v3036_v8 = vld [vmem:[%s5707_s1 + $0x4e8] sm:$0xf]  ;;  %v2845_v12 = vor.u32 %v3666_v5, %v2844_v4  ;;  %v3492_v3 = vld [vmem:[%s5707_s1 + $0x878] sm:$0xf]  ;;  %v3828_v5 = vld [vmem:[%s5707_s1 + $0x88c] sm:$0xf0] }
  0x67   :  { %2013 = vmatpush.bf16.msrb.mxu1 %v2773_v9  ;;  %1982 = vmatmul.bf16.vlgmr.msra.gmra.mxu2 %v4389_v6  ;;  %v3714_v9 = vld [vmem:[%s5707_s1 + $0x4fc] sm:$0xf0] }
  0x68   :  { %2026 = vmatpush.bf16.msrb.mxu2 %v2965_v10  ;;  %1995 = vmatmul.bf16.vlgmr.msra.gmra.mxu3 %v4391_v7  ;;  %v2461_v10 = vor.u32 %v3570_v0, %v2460_v63  ;;  %v3037_v16 = vor.u32 %v3714_v9, %v3036_v8  ;;  %v3517_v63 = vor.u32 %v3834_v56, %v3516_v53  ;;  %v3585_v8 = vld [vmem:[%s5707_s1 + $0xfc] sm:$0xf]  ;;  %v2534_v9 = vld [vmem:[%s5707_s1 + $0x110] sm:$0xf0]  ;;  %v3204_v53 = vld [vmem:[%s5707_s1 + $0x638] sm:$0xf] }
  0x69   :  { %2039 = vmatpush.bf16.msrb.mxu3 %v3157_v14  ;;  %v3564_v14 = vld [vmem:[%s5707_s1 + $0x4c] sm:$0xf0]  ;;  %v2561_v0 = vor.u32 %v3591_v57, %v2558_v58  ;;  %v3396_v56 = vld [vmem:[%s5707_s1 + $0x7b8] sm:$0xf] }
  0x6a   :  { %2001 = vmatpush.bf16.msrb.mxu0 %v2557_v20  ;;  %v3012_v20 = vld [vmem:[%s5707_s1 + $0x4b8] sm:$0xf]  ;;  %v3804_v58 = vld [vmem:[%s5707_s1 + $0x7cc] sm:$0xf0] }
  0x6b   :  { %2014 = vmatpush.bf16.msrb.mxu1 %v2749_v21  ;;  %v3708_v21 = vld [vmem:[%s5707_s1 + $0x4cc] sm:$0xf0] }
  0x6c   :  { %2027 = vmatpush.bf16.msrb.mxu2 %v2941_v22  ;;  %v2437_v22 = vor.u32 %v3564_v14, %v2436_v13  ;;  %v3013_v30 = vor.u32 %v3708_v21, %v3012_v20  ;;  %v3493_v13 = vor.u32 %v3828_v5, %v3492_v3  ;;  %v2537_v14 = vor.u32 %v3585_v8, %v2534_v9  ;;  %v3579_v20 = vld [vmem:[%s5707_s1 + $0xcc] sm:$0xf]  ;;  %v2510_v21 = vld [vmem:[%s5707_s1 + $0xe0] sm:$0xf0]  ;;  %v3372_v5 = vld [vmem:[%s5707_s1 + $0x788] sm:$0xf] }
  0x6d   :  { %2040 = vmatpush.bf16.msrb.mxu3 %v3133_v26  ;;  %v2821_v26 = vor.u32 %v3660_v19, %v2820_v18  ;;  %v3822_v19 = vld [vmem:[%s5707_s1 + $0x85c] sm:$0xf0]  ;;  %v3397_v3 = vor.u32 %v3804_v58, %v3396_v56  ;;  %v3555_v9 = vld [vmem:[%s5707_s1 + $0xc] sm:$0xf] }
  0x6e   :  { %2002 = vmatpush.bf16.msrb.mxu0 %v2533_v32  ;;  %v2988_v32 = vld [vmem:[%s5707_s1 + $0x488] sm:$0xf]  ;;  %v3798_v8 = vld [vmem:[%s5707_s1 + $0x79c] sm:$0xf0]  ;;  %v3675_v56 = vld [vmem:[%s5707_s1 + $0x3cc] sm:$0xf] }
  0x6f   :  { %2015 = vmatpush.bf16.msrb.mxu1 %v2725_v33  ;;  %v3702_v33 = vld [vmem:[%s5707_s1 + $0x49c] sm:$0xf0]  ;;  %v3723_v58 = vld [vmem:[%s5707_s1 + $0x54c] sm:$0xf] }
  0x70   :  { %2028 = vmatpush.bf16.msrb.mxu2 %v2917_v34  ;;  %v3348_v34 = vld [vmem:[%s5707_s1 + $0x758] sm:$0xf] }
  0x71   :  { %2041 = vmatpush.bf16.msrb.mxu3 %v3109_v38  ;;  %v3840_v38 = vld [vmem:[%s5707_s1 + $0x8ec] sm:$0xf0] }
  0x72   :  { %2003 = vmatpush.bf16.msrb.mxu0 %v2509_v44  ;;  %v2774_v44 = vld [vmem:[%s5707_s1 + $0x2f0] sm:$0xf0]  ;;  %v3541_v47 = vor.u32 %v3840_v38, %v3540_v36  ;;  %v3253_v36 = vor.u32 %v3768_v28, %v3252_v27 }
  0x73   :  { %2016 = vmatpush.bf16.msrb.mxu1 %v2701_v45  ;;  %v2989_v45 = vor.u32 %v3702_v33, %v2988_v32  ;;  %v2777_v54 = vor.u32 %v3645_v43, %v2774_v44  ;;  %v3573_v32 = vld [vmem:[%s5707_s1 + $0x9c] sm:$0xf]  ;;  %v2486_v33 = vld [vmem:[%s5707_s1 + $0xb0] sm:$0xf0]  ;;  %v3810_v43 = vld [vmem:[%s5707_s1 + $0x7fc] sm:$0xf0] }
  0x74   :  { %2029 = vmatpush.bf16.msrb.mxu2 %v2893_v46  ;;  %v3349_v46 = vor.u32 %v3792_v35, %v3348_v34  ;;  %v3621_v34 = vld [vmem:[%s5707_s1 + $0x21c] sm:$0xf]  ;;  %v2678_v35 = vld [vmem:[%s5707_s1 + $0x230] sm:$0xf0]  ;;  %v2489_v38 = vor.u32 %v3573_v32, %v2486_v33  ;;  %v3567_v44 = vld [vmem:[%s5707_s1 + $0x6c] sm:$0xf] }
  0x75   :  { %2042 = vmatpush.bf16.msrb.mxu3 %v3085_v52  ;;  %v3786_v52 = vld [vmem:[%s5707_s1 + $0x73c] sm:$0xf0]  ;;  %v3134_v33 = vld [vmem:[%s5707_s1 + $0x5c0] sm:$0xf0] }
  0x76   :  { %2004 = vmatpush.bf16.msrb.mxu0 %v2485_v60  ;;  %v3639_v60 = vld [vmem:[%s5707_s1 + $0x2ac] sm:$0xf] }
  0x77   :  { %2017 = vmatpush.bf16.msrb.mxu1 %v2677_v61  ;;  %v2750_v61 = vld [vmem:[%s5707_s1 + $0x2c0] sm:$0xf0] }
  0x78   :  { %2030 = vmatpush.bf16.msrb.mxu2 %v2869_v62  ;;  %v3325_v62 = vor.u32 %v3786_v52, %v3324_v49  ;;  %v2753_v4 = vor.u32 %v3639_v60, %v2750_v61  ;;  %v3561_v60 = vld [vmem:[%s5707_s1 + $0x3c] sm:$0xf]  ;;  %v2438_v61 = vld [vmem:[%s5707_s1 + $0x50] sm:$0xf0] }
  0x79   :  { %2043 = vmatpush.bf16.msrb.mxu3 %v3061_v2  ;;  %v3780_v2 = vld [vmem:[%s5707_s1 + $0x70c] sm:$0xf0] }
  0x7a   :  { %2005 = vmatpush.bf16.msrb.mxu0 %v2461_v10  ;;  %v3633_v10 = vld [vmem:[%s5707_s1 + $0x27c] sm:$0xf] }
  0x7b   :  { %2018 = vmatpush.bf16.msrb.mxu1 %v2653_v11  ;;  %v2726_v11 = vld [vmem:[%s5707_s1 + $0x290] sm:$0xf0] }
  0x7c   :  { %2031 = vmatpush.bf16.msrb.mxu2 %v2845_v12  ;;  %v3301_v12 = vor.u32 %v3780_v2, %v3300_v1  ;;  %v2729_v18 = vor.u32 %v3633_v10, %v2726_v11  ;;  %v3180_v1 = vld [vmem:[%s5707_s1 + $0x608] sm:$0xf]  ;;  %v3750_v2 = vld [vmem:[%s5707_s1 + $0x61c] sm:$0xf0]  ;;  %v2414_v11 = vld [vmem:[%s5707_s1 + $0x20] sm:$0xf0] }
  0x7d   :  { %2044 = vmatpush.bf16.msrb.mxu3 %v3037_v16  ;;  %v3774_v16 = vld [vmem:[%s5707_s1 + $0x6dc] sm:$0xf0] }
  0x7e   :  { %2006 = vmatpush.bf16.msrb.mxu0 %v2437_v22  ;;  %v3627_v22 = vld [vmem:[%s5707_s1 + $0x24c] sm:$0xf]  ;;  %v3277_v24 = vor.u32 %v3774_v16, %v3276_v15  ;;  %v2966_v15 = vld [vmem:[%s5707_s1 + $0x470] sm:$0xf0]  ;;  %v3741_v16 = vld [vmem:[%s5707_s1 + $0x5dc] sm:$0xf] }
  0x7f   :  { %2019 = vmatpush.bf16.msrb.mxu1 %v2629_v25  ;;  %v3469_v25 = vor.u32 %v3822_v19, %v3468_v17  ;;  %v3181_v17 = vor.u32 %v3750_v2, %v3180_v1  ;;  %v3789_v19 = vld [vmem:[%s5707_s1 + $0x75c] sm:$0xf]  ;;  %v3470_v1 = vld [vmem:[%s5707_s1 + $0x860] sm:$0xf0] }
  0x80   :  { %2032 = vmatpush.bf16.msrb.mxu2 %v2821_v26  ;;  %v2513_v26 = vor.u32 %v3579_v20, %v2510_v21  ;;  %v3350_v20 = vld [vmem:[%s5707_s1 + $0x770] sm:$0xf0]  ;;  %v3373_v21 = vor.u32 %v3798_v8, %v3372_v5  ;;  %v3669_v5 = vld [vmem:[%s5707_s1 + $0x39c] sm:$0xf] }
  0x81   :  { %2045 = vmatpush.bf16.msrb.mxu3 %v3013_v30  ;;  %v2705_v30 = vor.u32 %v3627_v22, %v2702_v23  ;;  %v2417_v22 = vor.u32 %v3555_v9, %v2414_v11  ;;  %v3837_v23 = vld [vmem:[%s5707_s1 + $0x8dc] sm:$0xf]  ;;  %v3353_v28 = vor.u32 %v3789_v19, %v3350_v20  ;;  %v2870_v8 = vld [vmem:[%s5707_s1 + $0x3b0] sm:$0xf0]  ;;  %v3663_v19 = vld [vmem:[%s5707_s1 + $0x36c] sm:$0xf] }
  0x82   :  { %2007 = vmatpush.bf16.msrb.mxu0 %v2413_v37  ;;  %v3445_v37 = vor.u32 %v3816_v31, %v3444_v29  ;;  %v3687_v29 = vld [vmem:[%s5707_s1 + $0x42c] sm:$0xf]  ;;  %v3717_v9 = vld [vmem:[%s5707_s1 + $0x51c] sm:$0xf]  ;;  %v3062_v11 = vld [vmem:[%s5707_s1 + $0x530] sm:$0xf0] }
  0x83   :  { %2020 = vmatpush.bf16.msrb.mxu1 %v2605_v41  ;;  %v3420_v41 = vld [vmem:[%s5707_s1 + $0x7e8] sm:$0xf]  ;;  %v3735_v31 = vld [vmem:[%s5707_s1 + $0x5ac] sm:$0xf]  ;;  %v2846_v20 = vld [vmem:[%s5707_s1 + $0x380] sm:$0xf0] }
  0x84   :  { %2033 = vmatpush.bf16.msrb.mxu2 %v2797_v42  ;;  %v2681_v42 = vor.u32 %v3621_v34, %v2678_v35  ;;  %v3421_v49 = vor.u32 %v3810_v43, %v3420_v41  ;;  %v3783_v34 = vld [vmem:[%s5707_s1 + $0x72c] sm:$0xf]  ;;  %v3326_v35 = vld [vmem:[%s5707_s1 + $0x740] sm:$0xf0]  ;;  %v3681_v41 = vld [vmem:[%s5707_s1 + $0x3fc] sm:$0xf] }
  0x85   :  { %2046 = vmatpush.bf16.msrb.mxu3 %v2989_v45  ;;  %2008 = vmatmul.bf16.vlgmr.msrb.gmra.mxu0 %v4242_v51  ;;  %v2462_v45 = vld [vmem:[%s5707_s1 + $0x80] sm:$0xf0]  ;;  %v3729_v43 = vld [vmem:[%s5707_s1 + $0x57c] sm:$0xf] }
  0x86   :  { %2052 = vmatpush.bf16.msra.mxu0 %v3349_v46  ;;  %2021 = vmatmul.bf16.vlgmr.msrb.gmra.mxu1 %v4255_v59  ;;  %v3615_v46 = vld [vmem:[%s5707_s1 + $0x1ec] sm:$0xf]  ;;  %v2465_v52 = vor.u32 %v3567_v44, %v2462_v45  ;;  %v3110_v45 = vld [vmem:[%s5707_s1 + $0x590] sm:$0xf0] }
  0x87   :  { %2065 = vmatpush.bf16.msra.mxu1 %v3541_v47  ;;  %2034 = vmatmul.bf16.vlgmr.msrb.gmra.mxu2 %v4240_v50  ;;  %v2654_v47 = vld [vmem:[%s5707_s1 + $0x200] sm:$0xf0] }
  0x88   :  { %2078 = vmatpush.bf16.msra.mxu2 %v2585_v48  ;;  %2047 = vmatmul.bf16.vlgmr.msrb.gmra.mxu3 %v4244_v55  ;;  %v3229_v48 = vor.u32 %v3762_v40, %v3228_v39  ;;  %v2657_v57 = vor.u32 %v3615_v46, %v2654_v47  ;;  %v3137_v39 = vor.u32 %v3735_v31, %v3134_v33  ;;  %v3777_v46 = vld [vmem:[%s5707_s1 + $0x6fc] sm:$0xf]  ;;  %v3302_v47 = vld [vmem:[%s5707_s1 + $0x710] sm:$0xf0] }
  0x89   :  { %2091 = vmatpush.bf16.msra.mxu3 %v2777_v54  ;;  %v3756_v54 = vld [vmem:[%s5707_s1 + $0x64c] sm:$0xf0]  ;;  %v3329_v40 = vor.u32 %v3783_v34, %v3326_v35  ;;  %v3705_v33 = vld [vmem:[%s5707_s1 + $0x4bc] sm:$0xf]  ;;  %v3014_v34 = vld [vmem:[%s5707_s1 + $0x4d0] sm:$0xf0] }
  0x8a   :  { %2053 = vmatpush.bf16.msra.mxu0 %v3325_v62  ;;  %v3609_v62 = vld [vmem:[%s5707_s1 + $0x1bc] sm:$0xf] }
  0x8b   :  { %2066 = vmatpush.bf16.msra.mxu1 %v3517_v63  ;;  %v2630_v63 = vld [vmem:[%s5707_s1 + $0x1d0] sm:$0xf0] }
  0x8c   :  { %2079 = vmatpush.bf16.msra.mxu2 %v2561_v0  ;;  %v3205_v0 = vor.u32 %v3756_v54, %v3204_v53  ;;  %v2633_v10 = vor.u32 %v3609_v62, %v2630_v63  ;;  %v3113_v53 = vor.u32 %v3729_v43, %v3110_v45  ;;  %v3305_v54 = vor.u32 %v3777_v46, %v3302_v47  ;;  %v3771_v62 = vld [vmem:[%s5707_s1 + $0x6cc] sm:$0xf]  ;;  %v3278_v63 = vld [vmem:[%s5707_s1 + $0x6e0] sm:$0xf0] }
  0x8d   :  { %2092 = vmatpush.bf16.msra.mxu3 %v2753_v4  ;;  %v2441_v4 = vor.u32 %v3561_v60, %v2438_v61  ;;  %v3086_v61 = vld [vmem:[%s5707_s1 + $0x560] sm:$0xf0]  ;;  %v3017_v45 = vor.u32 %v3705_v33, %v3014_v34  ;;  %v3637_v34 = vld [vmem:[%s5707_s1 + $0x294] sm:$0xf0] }
  0x8e   :  { %2054 = vmatpush.bf16.msra.mxu0 %v3301_v12  ;;  %v3603_v12 = vld [vmem:[%s5707_s1 + $0x18c] sm:$0xf]  ;;  %v2798_v43 = vld [vmem:[%s5707_s1 + $0x320] sm:$0xf0] }
  0x8f   :  { %2067 = vmatpush.bf16.msra.mxu1 %v3493_v13  ;;  %v2606_v13 = vld [vmem:[%s5707_s1 + $0x1a0] sm:$0xf0] }
  0x90   :  { %2080 = vmatpush.bf16.msra.mxu2 %v2537_v14  ;;  %v3693_v14 = vld [vmem:[%s5707_s1 + $0x45c] sm:$0xf]  ;;  %v2990_v47 = vld [vmem:[%s5707_s1 + $0x4a0] sm:$0xf0] }
  0x91   :  { %2093 = vmatpush.bf16.msra.mxu3 %v2729_v18  ;;  %v3158_v18 = vld [vmem:[%s5707_s1 + $0x5f0] sm:$0xf0] }
  0x92   :  { %2055 = vmatpush.bf16.msra.mxu0 %v3277_v24  ;;  %v3542_v24 = vld [vmem:[%s5707_s1 + $0x8f0] sm:$0xf0]  ;;  %v3161_v27 = vor.u32 %v3741_v16, %v3158_v18  ;;  %v2873_v16 = vor.u32 %v3669_v5, %v2870_v8  ;;  %v3745_v5 = vld [vmem:[%s5707_s1 + $0x5f4] sm:$0xf0] }
  0x93   :  { %2068 = vmatpush.bf16.msra.mxu1 %v3469_v25  ;;  %v2609_v25 = vor.u32 %v3603_v12, %v2606_v13  ;;  %v3545_v32 = vor.u32 %v3837_v23, %v3542_v24  ;;  %v3765_v12 = vld [vmem:[%s5707_s1 + $0x69c] sm:$0xf]  ;;  %v3254_v13 = vld [vmem:[%s5707_s1 + $0x6b0] sm:$0xf0]  ;;  %v3038_v23 = vld [vmem:[%s5707_s1 + $0x500] sm:$0xf0] }
  0x94   :  { %2081 = vmatpush.bf16.msra.mxu2 %v2513_v26  ;;  %v2969_v26 = vor.u32 %v3693_v14, %v2966_v15  ;;  %v3813_v14 = vld [vmem:[%s5707_s1 + $0x81c] sm:$0xf]  ;;  %v3446_v15 = vld [vmem:[%s5707_s1 + $0x830] sm:$0xf0]  ;;  %v3257_v18 = vor.u32 %v3765_v12, %v3254_v13  ;;  %v3759_v24 = vld [vmem:[%s5707_s1 + $0x66c] sm:$0xf] }
  0x95   :  { %2094 = vmatpush.bf16.msra.mxu3 %v2705_v30  ;;  %v2942_v30 = vld [vmem:[%s5707_s1 + $0x440] sm:$0xf0]  ;;  %v2564_v13 = vld [vmem:[%s5707_s1 + $0x130] sm:$0xf] }
  0x96   :  { %2056 = vmatpush.bf16.msra.mxu0 %v3253_v36  ;;  %v3831_v36 = vld [vmem:[%s5707_s1 + $0x8ac] sm:$0xf] }
  0x97   :  { %2069 = vmatpush.bf16.msra.mxu1 %v3445_v37  ;;  %v3518_v37 = vld [vmem:[%s5707_s1 + $0x8c0] sm:$0xf0] }
  0x98   :  { %2082 = vmatpush.bf16.msra.mxu2 %v2489_v38  ;;  %v2945_v38 = vor.u32 %v3687_v29, %v2942_v30  ;;  %v3521_v44 = vor.u32 %v3831_v36, %v3518_v37  ;;  %v3657_v29 = vld [vmem:[%s5707_s1 + $0x33c] sm:$0xf]  ;;  %v3206_v37 = vld [vmem:[%s5707_s1 + $0x650] sm:$0xf0] }
  0x99   :  { %2095 = vmatpush.bf16.msra.mxu3 %v2681_v42  ;;  %v2918_v42 = vld [vmem:[%s5707_s1 + $0x410] sm:$0xf0]  ;;  %v3753_v36 = vld [vmem:[%s5707_s1 + $0x63c] sm:$0xf] }
  0x9a   :  { %2057 = vmatpush.bf16.msra.mxu0 %v3229_v48  ;;  %v3825_v48 = vld [vmem:[%s5707_s1 + $0x87c] sm:$0xf]  ;;  %v3209_v46 = vor.u32 %v3753_v36, %v3206_v37  ;;  %v3685_v36 = vld [vmem:[%s5707_s1 + $0x414] sm:$0xf0] }
  0x9b   :  { %2070 = vmatpush.bf16.msra.mxu1 %v3421_v49  ;;  %v3494_v49 = vld [vmem:[%s5707_s1 + $0x890] sm:$0xf0] }
  0x9c   :  { %2083 = vmatpush.bf16.msra.mxu2 %v2465_v52  ;;  %v2921_v52 = vor.u32 %v3681_v41, %v2918_v42  ;;  %v3497_v60 = vor.u32 %v3825_v48, %v3494_v49  ;;  %v3651_v42 = vld [vmem:[%s5707_s1 + $0x30c] sm:$0xf] }
  0x9d   :  { %2096 = vmatpush.bf16.msra.mxu3 %v2657_v57  ;;  %v2894_v57 = vld [vmem:[%s5707_s1 + $0x3e0] sm:$0xf0]  ;;  %v3747_v48 = vld [vmem:[%s5707_s1 + $0x60c] sm:$0xf] }
  0x9e   :  { %2058 = vmatpush.bf16.msra.mxu0 %v3205_v0  ;;  %v3819_v0 = vld [vmem:[%s5707_s1 + $0x84c] sm:$0xf]  ;;  %v2897_v2 = vor.u32 %v3675_v56, %v2894_v57  ;;  %v3374_v56 = vld [vmem:[%s5707_s1 + $0x7a0] sm:$0xf0]  ;;  %v2588_v57 = vld [vmem:[%s5707_s1 + $0x160] sm:$0xf] }
  0x9f   :  { %2071 = vmatpush.bf16.msra.mxu1 %v3397_v3  ;;  %v3089_v3 = vor.u32 %v3723_v58, %v3086_v61  ;;  %v3601_v58 = vld [vmem:[%s5707_s1 + $0x174] sm:$0xf0]  ;;  %v2801_v61 = vor.u32 %v3651_v42, %v2798_v43 }
  0xa0   :  { %2084 = vmatpush.bf16.msra.mxu2 %v2441_v4  ;;  %v3281_v4 = vor.u32 %v3771_v62, %v3278_v63  ;;  %v3649_v62 = vld [vmem:[%s5707_s1 + $0x2f4] sm:$0xf0]  ;;  %v2972_v63 = vld [vmem:[%s5707_s1 + $0x460] sm:$0xf] }
  0xa1   :  { %2097 = vmatpush.bf16.msra.mxu3 %v2633_v10  ;;  %v3473_v10 = vor.u32 %v3819_v0, %v3470_v1  ;;  %v3697_v0 = vld [vmem:[%s5707_s1 + $0x474] sm:$0xf0] }
  0xa2   :  { %2059 = vmatpush.bf16.msra.mxu0 %v3181_v17  ;;  %v3065_v17 = vor.u32 %v3717_v9, %v3062_v11  ;;  %v2973_v12 = vor.u32 %v3697_v0, %v2972_v63  ;;  %v2492_v63 = vld [vmem:[%s5707_s1 + $0xa0] sm:$0xf]  ;;  %v3577_v0 = vld [vmem:[%s5707_s1 + $0xb4] sm:$0xf0] }
  0xa3   :  { %2072 = vmatpush.bf16.msra.mxu1 %v3373_v21  ;;  %v3711_v21 = vld [vmem:[%s5707_s1 + $0x4ec] sm:$0xf] }
  0xa4   :  { %2085 = vmatpush.bf16.msra.mxu2 %v2417_v22  ;;  %v3449_v22 = vor.u32 %v3813_v14, %v3446_v15  ;;  %v3041_v30 = vor.u32 %v3711_v21, %v3038_v23  ;;  %v3595_v14 = vld [vmem:[%s5707_s1 + $0x144] sm:$0xf0]  ;;  %v2756_v15 = vld [vmem:[%s5707_s1 + $0x2b0] sm:$0xf] }
  0xa5   :  { %2098 = vmatpush.bf16.msra.mxu3 %v2609_v25  ;;  %2060 = vmatmul.bf16.vlgmr.msra.gmra.mxu0 %v4389_v6  ;;  %v3230_v25 = vld [vmem:[%s5707_s1 + $0x680] sm:$0xf0]  ;;  %v3739_v23 = vld [vmem:[%s5707_s1 + $0x5c4] sm:$0xf0] }
  0xa6   :  { %2104 = vmatpush.bf16.msrb.mxu0 %v2969_v26  ;;  %2073 = vmatmul.bf16.vlgmr.msra.gmra.mxu1 %v4391_v7  ;;  %v3807_v26 = vld [vmem:[%s5707_s1 + $0x7ec] sm:$0xf]  ;;  %v3233_v31 = vor.u32 %v3759_v24, %v3230_v25  ;;  %v2565_v24 = vor.u32 %v3595_v14, %v2564_v13 }
  0xa7   :  { %2117 = vmatpush.bf16.msrb.mxu1 %v3161_v27  ;;  %2086 = vmatmul.bf16.vlgmr.msra.gmra.mxu2 %v4242_v51  ;;  %v3422_v27 = vld [vmem:[%s5707_s1 + $0x800] sm:$0xf0] }
  0xa8   :  { %2130 = vmatpush.bf16.msrb.mxu2 %v3353_v28  ;;  %2099 = vmatmul.bf16.vlgmr.msra.gmra.mxu3 %v4255_v59  ;;  %v2849_v28 = vor.u32 %v3663_v19, %v2846_v20  ;;  %v3425_v35 = vor.u32 %v3807_v26, %v3422_v27  ;;  %v2948_v19 = vld [vmem:[%s5707_s1 + $0x430] sm:$0xf]  ;;  %v3691_v20 = vld [vmem:[%s5707_s1 + $0x444] sm:$0xf0] }
  0xa9   :  { %2143 = vmatpush.bf16.msrb.mxu3 %v3545_v32  ;;  %v2822_v32 = vld [vmem:[%s5707_s1 + $0x350] sm:$0xf0]  ;;  %v2949_v27 = vor.u32 %v3691_v20, %v2948_v19  ;;  %v2852_v19 = vld [vmem:[%s5707_s1 + $0x370] sm:$0xf]  ;;  %v3667_v20 = vld [vmem:[%s5707_s1 + $0x384] sm:$0xf0] }
  0xaa   :  { %2105 = vmatpush.bf16.msrb.mxu0 %v2945_v38  ;;  %v5052_v38 = vld [vmem:[%s5708_s2] sm:$0x3f]  ;;  %v2825_v41 = vor.u32 %v3657_v29, %v2822_v32 }
  0xab   :  { %2118 = vmatpush.bf16.msrb.mxu1 %v3137_v39  ;;  %v3801_v39 = vld [vmem:[%s5707_s1 + $0x7bc] sm:$0xf]  ;;  %v392_v49 = vperm.slane %v5052_v38, 0  ;;  %v2540_v29 = vld [vmem:[%s5707_s1 + $0x100] sm:$0xf] }
  0xac   :  { %2131 = vmatpush.bf16.msrb.mxu2 %v3329_v40  ;;  %v3398_v40 = vld [vmem:[%s5707_s1 + $0x7d0] sm:$0xf0] }
  0xad   :  { %2144 = vmatpush.bf16.msrb.mxu3 %v3521_v44  ;;  %v3699_v44 = vld [vmem:[%s5707_s1 + $0x48c] sm:$0xf]  ;;  %v1853_v1 = vpop.f32.mrf.mxu0 }
  0xae   :  { %2106 = vmatpush.bf16.msrb.mxu0 %v2921_v52  ;;  %v3401_v52 = vor.u32 %v3801_v39, %v3398_v40  ;;  %v1854_v8 = vadd.f32 %v1853_v1, %v392_v49  ;;  %v3116_v39 = vld [vmem:[%s5707_s1 + $0x580] sm:$0xf]  ;;  %v3733_v40 = vld [vmem:[%s5707_s1 + $0x594] sm:$0xf0] }
  0xaf   :  { %2119 = vmatpush.bf16.msrb.mxu1 %v3113_v53  ;;  %v3182_v53 = vld [vmem:[%s5707_s1 + $0x620] sm:$0xf0]  ;;  %v3117_v49 = vor.u32 %v3733_v40, %v3116_v39  ;;  %v2684_v1 = vld [vmem:[%s5707_s1 + $0x220] sm:$0xf] }
  0xb0   :  { %2132 = vmatpush.bf16.msrb.mxu2 %v3305_v54  ;;  %v3795_v54 = vld [vmem:[%s5707_s1 + $0x78c] sm:$0xf] }
  0xb1   :  { %2145 = vmatpush.bf16.msrb.mxu3 %v3497_v60  ;;  %v2780_v60 = vld [vmem:[%s5707_s1 + $0x2e0] sm:$0xf]  ;;  %v3377_v9 = vor.u32 %v3795_v54, %v3374_v56  ;;  %v3679_v54 = vld [vmem:[%s5707_s1 + $0x3e4] sm:$0xf0]  ;;  %v3092_v56 = vld [vmem:[%s5707_s1 + $0x550] sm:$0xf] }
  0xb2   :  { %2107 = vmatpush.bf16.msrb.mxu0 %v2897_v2  ;;  %v2993_v2 = vor.u32 %v3699_v44, %v2990_v47  ;;  %v2781_v11 = vor.u32 %v3649_v62, %v2780_v60  ;;  %v2708_v47 = vld [vmem:[%s5707_s1 + $0x250] sm:$0xf] }
  0xb3   :  { %2120 = vmatpush.bf16.msrb.mxu1 %v3089_v3  ;;  %v3185_v3 = vor.u32 %v3747_v48, %v3182_v53  ;;  %v2900_v53 = vld [vmem:[%s5707_s1 + $0x3d0] sm:$0xf] }
  0xb4   :  { %2133 = vmatpush.bf16.msrb.mxu2 %v3281_v4  ;;  %v3164_v4 = vld [vmem:[%s5707_s1 + $0x5e0] sm:$0xf]  ;;  %v1879_v25 = vpop.f32.mrf.mxu2  ;;  %v2901_v62 = vor.u32 %v3679_v54, %v2900_v53  ;;  %v3607_v53 = vld [vmem:[%s5707_s1 + $0x1a4] sm:$0xf0]  ;;  %v2804_v54 = vld [vmem:[%s5707_s1 + $0x310] sm:$0xf] }
  0xb5   :  { %2146 = vmatpush.bf16.msrb.mxu3 %v3473_v10  ;;  %v2589_v10 = vor.u32 %v3601_v58, %v2588_v57  ;;  %v1892_v32 = vpop.f32.mrf.mxu3  ;;  %v1855_v37 = vpop.f32.mrf.mxu0  ;;  %v3727_v57 = vld [vmem:[%s5707_s1 + $0x564] sm:$0xf0] }
  0xb6   :  { %2108 = vmatpush.bf16.msrb.mxu0 %v2873_v16  ;;  %v1866_v16 = vpop.f32.mrf.mxu1  ;;  %v3661_v37 = vld [vmem:[%s5707_s1 + $0x354] sm:$0xf0] }
  0xb7   :  { %2121 = vmatpush.bf16.msrb.mxu1 %v3065_v17  ;;  %v3165_v17 = vor.u32 %v3745_v5, %v3164_v4  ;;  %v1867_v21 = vadd.f32 %v1866_v16, %v1854_v8  ;;  %v3625_v4 = vld [vmem:[%s5707_s1 + $0x234] sm:$0xf0]  ;;  %v2876_v5 = vld [vmem:[%s5707_s1 + $0x3a0] sm:$0xf]  ;;  %v2660_v16 = vld [vmem:[%s5707_s1 + $0x1f0] sm:$0xf] }
  0xb8   :  { %2134 = vmatpush.bf16.msrb.mxu2 %v3257_v18  ;;  %v3643_v18 = vld [vmem:[%s5707_s1 + $0x2c4] sm:$0xf0]  ;;  %v3673_v8 = vld [vmem:[%s5707_s1 + $0x3b4] sm:$0xf0]  ;;  %v2685_v13 = vor.u32 %v3625_v4, %v2684_v1 }
  0xb9   :  { %2147 = vmatpush.bf16.msrb.mxu3 %v3449_v22  ;;  %v3140_v22 = vld [vmem:[%s5707_s1 + $0x5b0] sm:$0xf]  ;;  %v2757_v26 = vor.u32 %v3643_v18, %v2756_v15  ;;  %v2877_v14 = vor.u32 %v3673_v8, %v2876_v5  ;;  %v3571_v15 = vld [vmem:[%s5707_s1 + $0x84] sm:$0xf0]  ;;  %v3841_v1 = vld [vmem:[%s5707_s1 + $0x8f4] sm:$0xf0] }
  0xba   :  { %2109 = vmatpush.bf16.msrb.mxu0 %v2849_v28  ;;  %v1880_v28 = vadd.f32 %v1879_v25, %v1867_v21  ;;  %v3141_v33 = vor.u32 %v3739_v23, %v3140_v22  ;;  %v393_v21 = vperm.slane %v5052_v38, 1  ;;  %v3044_v22 = vld [vmem:[%s5707_s1 + $0x4f0] sm:$0xf]  ;;  %v3715_v23 = vld [vmem:[%s5707_s1 + $0x504] sm:$0xf0] }
  0xbb   :  { %2122 = vmatpush.bf16.msrb.mxu1 %v3041_v30  ;;  %v3589_v30 = vld [vmem:[%s5707_s1 + $0x114] sm:$0xf0] }
  0xbc   :  { %2135 = vmatpush.bf16.msrb.mxu2 %v3233_v31  ;;  %v2732_v31 = vld [vmem:[%s5707_s1 + $0x280] sm:$0xf]  ;;  %v2541_v42 = vor.u32 %v3589_v30, %v2540_v29  ;;  %v1881_v60 = vpop.f32.mrf.mxu2  ;;  %v2853_v29 = vor.u32 %v3667_v20, %v2852_v19  ;;  %v3787_v19 = vld [vmem:[%s5707_s1 + $0x744] sm:$0xf0]  ;;  %v3524_v20 = vld [vmem:[%s5707_s1 + $0x8b0] sm:$0xf] }
  0xbd   :  { %2148 = vmatpush.bf16.msrb.mxu3 %v3425_v35  ;;  %v2924_v35 = vld [vmem:[%s5707_s1 + $0x400] sm:$0xf]  ;;  %v2733_v43 = vor.u32 %v3637_v34, %v2732_v31  ;;  %v3565_v31 = vld [vmem:[%s5707_s1 + $0x54] sm:$0xf0]  ;;  %v3045_v34 = vor.u32 %v3715_v23, %v3044_v22  ;;  %v3703_v60 = vld [vmem:[%s5707_s1 + $0x4a4] sm:$0xf0] }
  0xbe   :  { %2110 = vmatpush.bf16.msrb.mxu0 %v2825_v41  ;;  %v1893_v41 = vadd.f32 %v1892_v32, %v1880_v28  ;;  %v2925_v44 = vor.u32 %v3685_v36, %v2924_v35  ;;  %v1868_v48 = vpop.f32.mrf.mxu1  ;;  %v2444_v30 = vld [vmem:[%s5707_s1 + $0x40] sm:$0xf]  ;;  %v3613_v35 = vld [vmem:[%s5707_s1 + $0x1d4] sm:$0xf0]  ;;  %v3835_v22 = vld [vmem:[%s5707_s1 + $0x8c4] sm:$0xf0] }
  0xbf   :  { %2123 = vmatpush.bf16.msrb.mxu1 %v3017_v45  ;;  %v2516_v45 = vld [vmem:[%s5707_s1 + $0xd0] sm:$0xf]  ;;  %v2636_v32 = vld [vmem:[%s5707_s1 + $0x1c0] sm:$0xf]  ;;  %v3592_v23 = vld [vmem:[%s5707_s1 + $0x134] sm:$0xf] }
  0xc0   :  { %2136 = vmatpush.bf16.msrb.mxu2 %v3209_v46  ;;  %v3583_v46 = vld [vmem:[%s5707_s1 + $0xe4] sm:$0xf0]  ;;  %v2828_v36 = vld [vmem:[%s5707_s1 + $0x340] sm:$0xf]  ;;  %v2637_v48 = vor.u32 %v3613_v35, %v2636_v32  ;;  %v3586_v35 = vld [vmem:[%s5707_s1 + $0x104] sm:$0xf] }
  0xc1   :  { %2149 = vmatpush.bf16.msrb.mxu3 %v3401_v52  ;;  %v3631_v52 = vld [vmem:[%s5707_s1 + $0x264] sm:$0xf0]  ;;  %v2517_v58 = vor.u32 %v3583_v46, %v2516_v45  ;;  %v2420_v45 = vld [vmem:[%s5707_s1 + $0x10] sm:$0xf]  ;;  %v3500_v32 = vld [vmem:[%s5707_s1 + $0x880] sm:$0xf] }
  0xc2   :  { %2111 = vmatpush.bf16.msrb.mxu0 %v2801_v61  ;;  %v2709_v61 = vor.u32 %v3631_v52, %v2708_v47  ;;  %v3559_v46 = vld [vmem:[%s5707_s1 + $0x24] sm:$0xf0]  ;;  %v2612_v52 = vld [vmem:[%s5707_s1 + $0x190] sm:$0xf] }
  0xc3   :  { %2124 = vmatpush.bf16.msrb.mxu1 %v2993_v2  ;;  %v1894_v2 = vpop.f32.mrf.mxu3  ;;  %v2613_v8 = vor.u32 %v3607_v53, %v2612_v52  ;;  %v3580_v52 = vld [vmem:[%s5707_s1 + $0xd4] sm:$0xf]  ;;  %v2518_v53 = vld [vmem:[%s5707_s1 + $0xe8] sm:$0xf0] }
  0xc4   :  { %2137 = vmatpush.bf16.msrb.mxu2 %v3185_v3  ;;  %v3093_v3 = vor.u32 %v3727_v57, %v3092_v56  ;;  %v3655_v57 = vld [vmem:[%s5707_s1 + $0x324] sm:$0xf0]  ;;  %v3598_v2 = vld [vmem:[%s5707_s1 + $0x164] sm:$0xf] }
  0xc5   :  { %2150 = vmatpush.bf16.msrb.mxu3 %v3377_v9  ;;  %2112 = vmatmul.bf16.vlgmr.msrb.gmra.mxu0 %v4240_v50  ;;  %v3068_v9 = vld [vmem:[%s5707_s1 + $0x520] sm:$0xf] }
  0xc6   :  { %2156 = vmatpush.bf16.msra.mxu0 %v2589_v10  ;;  %2125 = vmatmul.bf16.vlgmr.msrb.gmra.mxu1 %v4244_v55  ;;  %v3721_v10 = vld [vmem:[%s5707_s1 + $0x534] sm:$0xf0] }
  0xc7   :  { %2169 = vmatpush.bf16.msra.mxu1 %v2781_v11  ;;  %2138 = vmatmul.bf16.vlgmr.msrb.gmra.mxu2 %v4389_v6  ;;  %v2493_v11 = vor.u32 %v3577_v0, %v2492_v63  ;;  %v3069_v18 = vor.u32 %v3721_v10, %v3068_v9  ;;  %v3548_v63 = vld [vmem:[%s5707_s1 + $0x8e0] sm:$0xf]  ;;  %v2421_v0 = vor.u32 %v3559_v46, %v2420_v45  ;;  %v3646_v10 = vld [vmem:[%s5707_s1 + $0x2e4] sm:$0xf]  ;;  %v3775_v45 = vld [vmem:[%s5707_s1 + $0x6e4] sm:$0xf0] }
  0xc8   :  { %2182 = vmatpush.bf16.msra.mxu2 %v2973_v12  ;;  %2151 = vmatmul.bf16.vlgmr.msrb.gmra.mxu3 %v4391_v7  ;;  %v2468_v12 = vld [vmem:[%s5707_s1 + $0x70] sm:$0xf]  ;;  %v2805_v9 = vor.u32 %v3655_v57, %v2804_v54  ;;  %v3628_v54 = vld [vmem:[%s5707_s1 + $0x254] sm:$0xf] }
  0xc9   :  { %2195 = vmatpush.bf16.msra.mxu3 %v3165_v17  ;;  %v3619_v17 = vld [vmem:[%s5707_s1 + $0x204] sm:$0xf0]  ;;  %v2469_v25 = vor.u32 %v3571_v15, %v2468_v12  ;;  %v3476_v46 = vld [vmem:[%s5707_s1 + $0x850] sm:$0xf] }
  0xca   :  { %2157 = vmatpush.bf16.msra.mxu0 %v2565_v24  ;;  %v1905_v24 = vpop.f32.mrf.mxu0  ;;  %v2661_v28 = vor.u32 %v3619_v17, %v2660_v16  ;;  %v3549_v16 = vor.u32 %v3841_v1, %v3548_v63  ;;  %v3769_v1 = vld [vmem:[%s5707_s1 + $0x6b4] sm:$0xf0] }
  0xcb   :  { %2170 = vmatpush.bf16.msra.mxu1 %v2757_v26  ;;  %v1918_v26 = vpop.f32.mrf.mxu1  ;;  %v1944_v40 = vpop.f32.mrf.mxu3 }
  0xcc   :  { %2183 = vmatpush.bf16.msra.mxu2 %v2949_v27  ;;  %v1906_v27 = vadd.f32 %v1905_v24, %v1893_v41  ;;  %v2566_v24 = vld [vmem:[%s5707_s1 + $0x148] sm:$0xf0] }
  0xcd   :  { %2196 = vmatpush.bf16.msra.mxu3 %v3141_v33  ;;  %v1931_v33 = vpop.f32.mrf.mxu2 }
  0xce   :  { %2158 = vmatpush.bf16.msra.mxu0 %v2541_v42  ;;  %v1932_v39 = vadd.f32 %v1931_v33, %v393_v21  ;;  %v5252_v41 = vadd.f32 %v1918_v26, %v1906_v27  ;;  %v3020_v42 = vld [vmem:[%s5707_s1 + $0x4c0] sm:$0xf]  ;;  %v2758_v26 = vld [vmem:[%s5707_s1 + $0x2c8] sm:$0xf0] }
  0xcf   :  { %2171 = vmatpush.bf16.msra.mxu1 %v2733_v43  ;;  %v3709_v43 = vld [vmem:[%s5707_s1 + $0x4d4] sm:$0xf0] }
  0xd0   :  { %2184 = vmatpush.bf16.msra.mxu2 %v2925_v44  ;;  %v2445_v44 = vor.u32 %v3565_v31, %v2444_v30  ;;  %v5266_v47 = vadd.f32 %v1944_v40, %v1932_v39  ;;  %v3021_v56 = vor.u32 %v3709_v43, %v3020_v42  ;;  %v3308_v30 = vld [vmem:[%s5707_s1 + $0x700] sm:$0xf]  ;;  %v3781_v31 = vld [vmem:[%s5707_s1 + $0x714] sm:$0xf0]  ;;  %v2734_v39 = vld [vmem:[%s5707_s1 + $0x298] sm:$0xf0]  ;;  %3843 = vtanh.f32 %v5252_v41 }
  0xd1   :  { %2197 = vmatpush.bf16.msra.mxu3 %v3117_v49  ;;  %v2829_v49 = vor.u32 %v3661_v37, %v2828_v36  ;;  %v2542_v36 = vld [vmem:[%s5707_s1 + $0x118] sm:$0xf0]  ;;  %v3634_v37 = vld [vmem:[%s5707_s1 + $0x284] sm:$0xf]  ;;  %v3309_v40 = vor.u32 %v3781_v31, %v3308_v30  ;;  %v3757_v41 = vld [vmem:[%s5707_s1 + $0x654] sm:$0xf0] }
  0xd2   :  { %2159 = vmatpush.bf16.msra.mxu0 %v2517_v58  ;;  %v2996_v58 = vld [vmem:[%s5707_s1 + $0x490] sm:$0xf]  ;;  %v1907_v4 = vpop.f32.mrf.mxu0  ;;  %v2545_v43 = vor.u32 %v3586_v35, %v2542_v36  ;;  %v3805_v36 = vld [vmem:[%s5707_s1 + $0x7d4] sm:$0xf0] }
  0xd3   :  { %2172 = vmatpush.bf16.msra.mxu1 %v2709_v61  ;;  %v3356_v61 = vld [vmem:[%s5707_s1 + $0x760] sm:$0xf]  ;;  %v1920_v5 = vpop.f32.mrf.mxu1  ;;  %v1946_v15 = vpop.f32.mrf.mxu3  ;;  %v3817_v4 = vld [vmem:[%s5707_s1 + $0x834] sm:$0xf0] }
  0xd4   :  { %2185 = vmatpush.bf16.msra.mxu2 %v2901_v62  ;;  %v3793_v62 = vld [vmem:[%s5707_s1 + $0x774] sm:$0xf0]  ;;  %v2494_v5 = vld [vmem:[%s5707_s1 + $0xb8] sm:$0xf0]  ;;  %v3236_v15 = vld [vmem:[%s5707_s1 + $0x670] sm:$0xf] }
  0xd5   :  { %2198 = vmatpush.bf16.msra.mxu3 %v3093_v3  ;;  %v2590_v3 = vld [vmem:[%s5707_s1 + $0x178] sm:$0xf0]  ;;  %v1933_v12 = vpop.f32.mrf.mxu2 }
  0xd6   :  { %2160 = vmatpush.bf16.msra.mxu0 %v2493_v11  ;;  %v2782_v11 = vld [vmem:[%s5707_s1 + $0x2f8] sm:$0xf0]  ;;  %v2593_v17 = vor.u32 %v3598_v2, %v2590_v3  ;;  %v3452_v2 = vld [vmem:[%s5707_s1 + $0x820] sm:$0xf] }
  0xd7   :  { %2173 = vmatpush.bf16.msra.mxu1 %v2685_v13  ;;  %v2997_v13 = vor.u32 %v3703_v60, %v2996_v58  ;;  %v2785_v21 = vor.u32 %v3646_v10, %v2782_v11  ;;  %v2686_v10 = vld [vmem:[%s5707_s1 + $0x238] sm:$0xf0]  ;;  %v3453_v12 = vor.u32 %v3817_v4, %v3452_v2 }
  0xd8   :  { %2186 = vmatpush.bf16.msra.mxu2 %v2877_v14  ;;  %v3357_v14 = vor.u32 %v3793_v62, %v3356_v61  ;;  %v2521_v61 = vor.u32 %v3580_v52, %v2518_v53  ;;  %v3380_v53 = vld [vmem:[%s5707_s1 + $0x790] sm:$0xf]  ;;  %v2974_v2 = vld [vmem:[%s5707_s1 + $0x478] sm:$0xf0] }
  0xd9   :  { %2199 = vmatpush.bf16.msra.mxu3 %v3069_v18  ;;  %v3332_v18 = vld [vmem:[%s5707_s1 + $0x730] sm:$0xf] }
  0xda   :  { %2161 = vmatpush.bf16.msra.mxu0 %v2469_v25  ;;  %v3640_v25 = vld [vmem:[%s5707_s1 + $0x2b4] sm:$0xf]  ;;  %v3333_v27 = vor.u32 %v3787_v19, %v3332_v18 }
  0xdb   :  { %2174 = vmatpush.bf16.msra.mxu1 %v2661_v28  ;;  %v3525_v28 = vor.u32 %v3835_v22, %v3524_v20  ;;  %v2761_v33 = vor.u32 %v3640_v25, %v2758_v26  ;;  %v3568_v22 = vld [vmem:[%s5707_s1 + $0x74] sm:$0xf]  ;;  %v2662_v25 = vld [vmem:[%s5707_s1 + $0x208] sm:$0xf0]  ;;  %v5439_v26 = vld [vmem:[%s5709_s3] sm:$0x3f] }
  0xdc   :  { %2187 = vmatpush.bf16.msra.mxu2 %v2853_v29  ;;  %v2569_v29 = vor.u32 %v3592_v23, %v2566_v24  ;;  %v2470_v23 = vld [vmem:[%s5707_s1 + $0x88] sm:$0xf0]  ;;  %v3616_v24 = vld [vmem:[%s5707_s1 + $0x1f4] sm:$0xf] }
  0xdd   :  { %2200 = vmatpush.bf16.msra.mxu3 %v3045_v34  ;;  %v3829_v34 = vld [vmem:[%s5707_s1 + $0x894] sm:$0xf0]  ;;  %v2473_v31 = vor.u32 %v3568_v22, %v2470_v23  ;;  %v2665_v35 = vor.u32 %v3616_v24, %v2662_v25  ;;  %v3736_v22 = vld [vmem:[%s5707_s1 + $0x5b4] sm:$0xf]  ;;  %v3142_v25 = vld [vmem:[%s5707_s1 + $0x5c8] sm:$0xf0] }
  0xde   :  { %2162 = vmatpush.bf16.msra.mxu0 %v2445_v44  ;;  %v3501_v42 = vor.u32 %v3829_v34, %v3500_v32  ;;  %v3284_v44 = vld [vmem:[%s5707_s1 + $0x6d0] sm:$0xf]  ;;  %v3212_v32 = vld [vmem:[%s5707_s1 + $0x640] sm:$0xf] }
  0xdf   :  { %2175 = vmatpush.bf16.msra.mxu1 %v2637_v48  ;;  %v2737_v48 = vor.u32 %v3634_v37, %v2734_v39  ;;  %v3285_v57 = vor.u32 %v3775_v45, %v3284_v44  ;;  %v3562_v37 = vld [vmem:[%s5707_s1 + $0x44] sm:$0xf]  ;;  %v2446_v39 = vld [vmem:[%s5707_s1 + $0x58] sm:$0xf0]  ;;  %v2321_v44 = vperm.slane %v5439_v26, 1  ;;  %v3213_v45 = vor.u32 %v3757_v41, %v3212_v32 }
  0xe0   :  { %2188 = vmatpush.bf16.msra.mxu2 %v2829_v49  ;;  %v3823_v49 = vld [vmem:[%s5707_s1 + $0x864] sm:$0xf0]  ;;  %v2449_v52 = vor.u32 %v3562_v37, %v2446_v39  ;;  %v3145_v32 = vor.u32 %v3736_v22, %v3142_v25  ;;  %v3118_v37 = vld [vmem:[%s5707_s1 + $0x598] sm:$0xf0]  ;;  %v3778_v39 = vld [vmem:[%s5707_s1 + $0x704] sm:$0xf] }
  0xe1   :  { %2201 = vmatpush.bf16.msra.mxu3 %v3021_v56  ;;  %v2710_v56 = vld [vmem:[%s5707_s1 + $0x268] sm:$0xf0]  ;;  %v3477_v60 = vor.u32 %v3823_v49, %v3476_v46  ;;  %v3188_v46 = vld [vmem:[%s5707_s1 + $0x610] sm:$0xf]  ;;  %v3808_v25 = vld [vmem:[%s5707_s1 + $0x7f4] sm:$0xf] }
  0xe2   :  { %2163 = vmatpush.bf16.msra.mxu0 %v2421_v0  ;;  %v1957_v58 = vpop.f32.mrf.mxu0  ;;  %v3260_v0 = vld [vmem:[%s5707_s1 + $0x6a0] sm:$0xf]  ;;  %v2713_v3 = vor.u32 %v3628_v54, %v2710_v56  ;;  %v3799_v54 = vld [vmem:[%s5707_s1 + $0x7a4] sm:$0xf0]  ;;  %v3556_v56 = vld [vmem:[%s5707_s1 + $0x14] sm:$0xf] }
  0xe3   :  { %2176 = vmatpush.bf16.msra.mxu1 %v2613_v8  ;;  %v1958_v62 = vadd.f32 %v1957_v58, %v5266_v47  ;;  %v1970_v63 = vpop.f32.mrf.mxu1  ;;  %v3574_v47 = vld [vmem:[%s5707_s1 + $0xa4] sm:$0xf]  ;;  %v3261_v11 = vor.u32 %v3769_v1, %v3260_v0  ;;  %v3844_v58 = vpop.eup %3843  ;;  %v3238_v22 = vld [vmem:[%s5707_s1 + $0x688] sm:$0xf0] }
  0xe4   :  { %2189 = vmatpush.bf16.msra.mxu2 %v2805_v9  ;;  %v3622_v9 = vld [vmem:[%s5707_s1 + $0x224] sm:$0xf] }
  0xe5   :  { %2202 = vmatpush.bf16.msra.mxu3 %v2997_v13  ;;  %2164 = vmatmul.bf16.vlgmr.msra.gmra.mxu0 %v4242_v51  ;;  %v1971_v8 = vadd.f32 %v1970_v63, %v1958_v62  ;;  %v2497_v13 = vor.u32 %v3574_v47, %v2494_v5  ;;  %v2689_v18 = vor.u32 %v3622_v9, %v2686_v10  ;;  %v3604_v62 = vld [vmem:[%s5707_s1 + $0x194] sm:$0xf]  ;;  %v2614_v63 = vld [vmem:[%s5707_s1 + $0x1a8] sm:$0xf0]  ;;  %v3694_v1 = vld [vmem:[%s5707_s1 + $0x464] sm:$0xf] }
  0xe6   :  { %2208 = vmatpush.bf16.msrb.mxu0 %v3357_v14  ;;  %2177 = vmatmul.bf16.vlgmr.msra.gmra.mxu1 %v4255_v59  ;;  %v3381_v5 = vor.u32 %v3799_v54, %v3380_v53  ;;  %v3790_v9 = vld [vmem:[%s5707_s1 + $0x764] sm:$0xf]  ;;  %v3358_v10 = vld [vmem:[%s5707_s1 + $0x778] sm:$0xf0]  ;;  %v3094_v53 = vld [vmem:[%s5707_s1 + $0x568] sm:$0xf0] }
  0xe7   :  { %2221 = vmatpush.bf16.msrb.mxu1 %v3549_v16  ;;  %2190 = vmatmul.bf16.vlgmr.msra.gmra.mxu2 %v4240_v50  ;;  %v3763_v16 = vld [vmem:[%s5707_s1 + $0x684] sm:$0xf0]  ;;  %v3772_v54 = vld [vmem:[%s5707_s1 + $0x6d4] sm:$0xf] }
  0xe8   :  { %2234 = vmatpush.bf16.msrb.mxu2 %v2593_v17  ;;  %2203 = vmatmul.bf16.vlgmr.msra.gmra.mxu3 %v4244_v55  ;;  %v3428_v17 = vld [vmem:[%s5707_s1 + $0x7f0] sm:$0xf] }
  0xe9   :  { %2247 = vmatpush.bf16.msrb.mxu3 %v2785_v21  ;;  %v3811_v21 = vld [vmem:[%s5707_s1 + $0x804] sm:$0xf0] }
  0xea   :  { %2209 = vmatpush.bf16.msrb.mxu0 %v3333_v27  ;;  %v1983_v14 = vpop.f32.mrf.mxu2  ;;  %v3429_v30 = vor.u32 %v3811_v21, %v3428_v17  ;;  %v2977_v17 = vor.u32 %v3694_v1, %v2974_v2  ;;  %v2950_v21 = vld [vmem:[%s5707_s1 + $0x448] sm:$0xf0]  ;;  %v3670_v2 = vld [vmem:[%s5707_s1 + $0x3a4] sm:$0xf] }
  0xeb   :  { %2222 = vmatpush.bf16.msrb.mxu1 %v3525_v28  ;;  %v1984_v19 = vadd.f32 %v1983_v14, %v1971_v8  ;;  %v1996_v20 = vpop.f32.mrf.mxu3  ;;  %v3237_v28 = vor.u32 %v3763_v16, %v3236_v15  ;;  %v1972_v34 = vpop.f32.mrf.mxu1  ;;  %v3166_v8 = vld [vmem:[%s5707_s1 + $0x5f8] sm:$0xf0]  ;;  %v3838_v14 = vld [vmem:[%s5707_s1 + $0x8e4] sm:$0xf]  ;;  %v2617_v16 = vor.u32 %v3604_v62, %v2614_v63 }
  0xec   :  { %2235 = vmatpush.bf16.msrb.mxu2 %v2569_v29  ;;  %v1959_v29 = vpop.f32.mrf.mxu0  ;;  %v3550_v15 = vld [vmem:[%s5707_s1 + $0x8f8] sm:$0xf0] }
  0xed   :  { %2248 = vmatpush.bf16.msrb.mxu3 %v2761_v33  ;;  %v1997_v27 = vadd.f32 %v1996_v20, %v1984_v19  ;;  %v3404_v33 = vld [vmem:[%s5707_s1 + $0x7c0] sm:$0xf]  ;;  %v3361_v19 = vor.u32 %v3790_v9, %v3358_v10  ;;  %v3688_v20 = vld [vmem:[%s5707_s1 + $0x434] sm:$0xf]  ;;  %v3553_v24 = vor.u32 %v3838_v14, %v3550_v15  ;;  %v2926_v34 = vld [vmem:[%s5707_s1 + $0x418] sm:$0xf0] }
  0xee   :  { %2210 = vmatpush.bf16.msrb.mxu0 %v3309_v40  ;;  %v3610_v40 = vld [vmem:[%s5707_s1 + $0x1c4] sm:$0xf]  ;;  %v3405_v49 = vor.u32 %v3805_v36, %v3404_v33  ;;  %v3832_v29 = vld [vmem:[%s5707_s1 + $0x8b4] sm:$0xf]  ;;  %v3262_v9 = vld [vmem:[%s5707_s1 + $0x6b8] sm:$0xf0] }
  0xef   :  { %2223 = vmatpush.bf16.msrb.mxu1 %v3501_v42  ;;  %3845 = vtanh.f32 %v1997_v27  ;;  %v2638_v42 = vld [vmem:[%s5707_s1 + $0x1d8] sm:$0xf0]  ;;  %v3784_v27 = vld [vmem:[%s5707_s1 + $0x734] sm:$0xf]  ;;  %v3682_v33 = vld [vmem:[%s5707_s1 + $0x404] sm:$0xf] }
  0xf0   :  { %2236 = vmatpush.bf16.msrb.mxu2 %v2545_v43  ;;  %v2320_v43 = vperm.slane %v5439_v26, 0 }
  0xf1   :  { %2249 = vmatpush.bf16.msrb.mxu3 %v2737_v48  ;;  %v3751_v48 = vld [vmem:[%s5707_s1 + $0x624] sm:$0xf0] }
  0xf2   :  { %2211 = vmatpush.bf16.msrb.mxu0 %v3285_v57  ;;  %v1985_v57 = vpop.f32.mrf.mxu2  ;;  %v3189_v47 = vor.u32 %v3751_v48, %v3188_v46 }
  0xf3   :  { %2224 = vmatpush.bf16.msrb.mxu1 %v3477_v60  ;;  %v2641_v60 = vor.u32 %v3610_v40, %v2638_v42  ;;  %v1998_v0 = vpop.f32.mrf.mxu3  ;;  %v3310_v40 = vld [vmem:[%s5707_s1 + $0x718] sm:$0xf0]  ;;  %v3826_v42 = vld [vmem:[%s5707_s1 + $0x884] sm:$0xf]  ;;  %v3820_v57 = vld [vmem:[%s5707_s1 + $0x854] sm:$0xf] }
  0xf4   :  { %2237 = vmatpush.bf16.msrb.mxu2 %v2521_v61  ;;  %v2422_v61 = vld [vmem:[%s5707_s1 + $0x28] sm:$0xf0]  ;;  %v3313_v48 = vor.u32 %v3778_v39, %v3310_v40  ;;  %v3022_v40 = vld [vmem:[%s5707_s1 + $0x4d8] sm:$0xf0] }
  0xf5   :  { %2250 = vmatpush.bf16.msrb.mxu3 %v2713_v3  ;;  %v3742_v3 = vld [vmem:[%s5707_s1 + $0x5e4] sm:$0xf]  ;;  %v3846_v4 = vpop.eup %3845 }
  0xf6   :  { %2212 = vmatpush.bf16.msrb.mxu0 %v3261_v11  ;;  %v2332_v11 = vmul.f32 %v3844_v58, %v2320_v43  ;;  %v3502_v43 = vld [vmem:[%s5707_s1 + $0x898] sm:$0xf0]  ;;  %v3478_v58 = vld [vmem:[%s5707_s1 + $0x868] sm:$0xf0] }
  0xf7   :  { %2225 = vmatpush.bf16.msrb.mxu1 %v3453_v12  ;;  %v2333_v12 = vmul.f32 %v3846_v4, %v2321_v44  ;;  %v2929_v44 = vor.u32 %v3682_v33, %v2926_v34  ;;  %v3718_v4 = vld [vmem:[%s5707_s1 + $0x524] sm:$0xf] }
  0xf8   :  { %2238 = vmatpush.bf16.msrb.mxu2 %v2497_v13  ;;  %v2425_v13 = vor.u32 %v3556_v56, %v2422_v61  ;;  %v3286_v56 = vld [vmem:[%s5707_s1 + $0x6e8] sm:$0xf0]  ;;  %v3658_v34 = vld [vmem:[%s5707_s1 + $0x344] sm:$0xf] }
  0xf9   :  { %2251 = vmatpush.bf16.msrb.mxu3 %v2689_v18  ;;  %v3169_v18 = vor.u32 %v3742_v3, %v3166_v8  ;;  %v5524_v23 = vadd.f32 %v2333_v12, %v2332_v11  ;;  %v3289_v1 = vor.u32 %v3772_v54, %v3286_v56  ;;  %v2878_v3 = vld [vmem:[%s5707_s1 + $0x3b8] sm:$0xf0]  ;;  %v3766_v8 = vld [vmem:[%s5707_s1 + $0x6a4] sm:$0xf]  ;;  %v2998_v54 = vld [vmem:[%s5707_s1 + $0x4a8] sm:$0xf0] }
  0xfa   :  { %2213 = vmatpush.bf16.msrb.mxu0 %v3237_v28  ;;  %v3334_v28 = vld [vmem:[%s5707_s1 + $0x748] sm:$0xf0]  ;;  %v3814_v11 = vld [vmem:[%s5707_s1 + $0x824] sm:$0xf]  ;;  %v3454_v12 = vld [vmem:[%s5707_s1 + $0x838] sm:$0xf0]  ;;  %v3265_v15 = vor.u32 %v3766_v8, %v3262_v9 }
  0xfb   :  { %2226 = vmatpush.bf16.msrb.mxu1 %v3429_v30  ;;  %v3526_v30 = vld [vmem:[%s5707_s1 + $0x8c8] sm:$0xf0]  ;;  %v3337_v41 = vor.u32 %v3784_v27, %v3334_v28  ;;  %v3748_v56 = vld [vmem:[%s5707_s1 + $0x614] sm:$0xf]  ;;  %v395_v8 = vperm.slane %v5052_v38, 3 }
  0xfc   :  { %2239 = vmatpush.bf16.msrb.mxu2 %v2473_v31  ;;  %v2953_v31 = vor.u32 %v3688_v20, %v2950_v21  ;;  %v3529_v36 = vor.u32 %v3832_v29, %v3526_v30  ;;  %v3046_v20 = vld [vmem:[%s5707_s1 + $0x508] sm:$0xf0]  ;;  %v3760_v21 = vld [vmem:[%s5707_s1 + $0x674] sm:$0xf] }
  0xfd   :  { %2252 = vmatpush.bf16.msrb.mxu3 %v2665_v35  ;;  %v3730_v35 = vld [vmem:[%s5707_s1 + $0x584] sm:$0xf]  ;;  %v3430_v27 = vld [vmem:[%s5707_s1 + $0x808] sm:$0xf0]  ;;  %v3241_v33 = vor.u32 %v3760_v21, %v3238_v22 }
  0xfe   :  { %2214 = vmatpush.bf16.msrb.mxu0 %v3213_v45  ;;  %v394_v45 = vperm.slane %v5052_v38, 2  ;;  %v3121_v46 = vor.u32 %v3730_v35, %v3118_v37  ;;  %v2830_v35 = vld [vmem:[%s5707_s1 + $0x358] sm:$0xf0]  ;;  %v3433_v39 = vor.u32 %v3808_v25, %v3430_v27 }
  0xff   :  { %2227 = vmatpush.bf16.msrb.mxu1 %v3405_v49  ;;  %v2902_v49 = vld [vmem:[%s5707_s1 + $0x3e8] sm:$0xf0] }
 0x100   :  { %2240 = vmatpush.bf16.msrb.mxu2 %v2449_v52  ;;  %v3724_v52 = vld [vmem:[%s5707_s1 + $0x554] sm:$0xf] }
 0x101   :  { %2253 = vmatpush.bf16.msrb.mxu3 %v2641_v60  ;;  %v3097_v0 = vor.u32 %v3724_v52, %v3094_v53  ;;  %v2806_v52 = vld [vmem:[%s5707_s1 + $0x328] sm:$0xf0] }
 0x102   :  { %2215 = vmatpush.bf16.msrb.mxu0 %v3189_v47  ;;  %v2009_v60 = vpop.f32.mrf.mxu0  ;;  %v3481_v47 = vor.u32 %v3820_v57, %v3478_v58  ;;  %v3190_v57 = vld [vmem:[%s5707_s1 + $0x628] sm:$0xf0] }
 0x103   :  { %2228 = vmatpush.bf16.msrb.mxu1 %v3381_v5  ;;  %v2010_v62 = vadd.f32 %v2009_v60, %v394_v45  ;;  %v2022_v63 = vpop.f32.mrf.mxu1  ;;  %v3070_v5 = vld [vmem:[%s5707_s1 + $0x538] sm:$0xf0]  ;;  %v3796_v60 = vld [vmem:[%s5707_s1 + $0x794] sm:$0xf] }
 0x104   :  { %2241 = vmatpush.bf16.msrb.mxu2 %v2425_v13  ;;  %v2881_v13 = vor.u32 %v3670_v2, %v2878_v3  ;;  %v3073_v14 = vor.u32 %v3718_v4, %v3070_v5  ;;  %v3406_v45 = vld [vmem:[%s5707_s1 + $0x7d8] sm:$0xf0] }
 0x105   :  { %2254 = vmatpush.bf16.msrb.mxu3 %v2617_v16  ;;  %2216 = vmatmul.bf16.vlgmr.msrb.gmra.mxu0 %v4389_v6  ;;  %v2023_v10 = vadd.f32 %v2022_v63, %v2010_v62  ;;  %v3664_v16 = vld [vmem:[%s5707_s1 + $0x374] sm:$0xf] }
 0x106   :  { %2260 = vmatpush.bf16.msra.mxu0 %v2977_v17  ;;  %2229 = vmatmul.bf16.vlgmr.msrb.gmra.mxu1 %v4391_v7  ;;  %v2854_v17 = vld [vmem:[%s5707_s1 + $0x388] sm:$0xf0] }
 0x107   :  { %2273 = vmatpush.bf16.msra.mxu1 %v3169_v18  ;;  %2242 = vmatmul.bf16.vlgmr.msrb.gmra.mxu2 %v4242_v51  ;;  %v3676_v51 = vld [vmem:[%s5707_s1 + $0x3d4] sm:$0xf] }
 0x108   :  { %2286 = vmatpush.bf16.msra.mxu2 %v3361_v19  ;;  %2255 = vmatmul.bf16.vlgmr.msrb.gmra.mxu3 %v4255_v59  ;;  %v3505_v59 = vor.u32 %v3826_v42, %v3502_v43  ;;  %v2905_v61 = vor.u32 %v3676_v51, %v2902_v49  ;;  %v3712_v18 = vld [vmem:[%s5707_s1 + $0x4f4] sm:$0xf]  ;;  %v3457_v19 = vor.u32 %v3814_v11, %v3454_v12  ;;  %v3754_v42 = vld [vmem:[%s5707_s1 + $0x644] sm:$0xf]  ;;  %v3214_v43 = vld [vmem:[%s5707_s1 + $0x658] sm:$0xf0] }
 0x109   :  { %2299 = vmatpush.bf16.msra.mxu3 %v3553_v24  ;;  %v3217_v51 = vor.u32 %v3754_v42, %v3214_v43  ;;  %v3652_v49 = vld [vmem:[%s5707_s1 + $0x314] sm:$0xf] }
 0x10a   :  { %2261 = vmatpush.bf16.msra.mxu0 %v2953_v31  ;;  %v2035_v24 = vpop.f32.mrf.mxu2  ;;  %v2011_v28 = vpop.f32.mrf.mxu0  ;;  %v2857_v31 = vor.u32 %v3664_v16, %v2854_v17  ;;  %v2809_v63 = vor.u32 %v3652_v49, %v2806_v52 }
 0x10b   :  { %2274 = vmatpush.bf16.msra.mxu1 %v3145_v32  ;;  %v2036_v29 = vadd.f32 %v2035_v24, %v2023_v10  ;;  %v2048_v30 = vpop.f32.mrf.mxu3  ;;  %v2024_v32 = vpop.f32.mrf.mxu1 }
 0x10c   :  { %2287 = vmatpush.bf16.msra.mxu2 %v3337_v41  ;;  %v3049_v41 = vor.u32 %v3712_v18, %v3046_v20 }
 0x10d   :  { %2300 = vmatpush.bf16.msra.mxu3 %v3529_v36  ;;  %v3706_v36 = vld [vmem:[%s5707_s1 + $0x4c4] sm:$0xf]  ;;  %v2049_v37 = vadd.f32 %v2048_v30, %v2036_v29  ;;  %v2323_v29 = vperm.slane %v5439_v26, 3 }
 0x10e   :  { %2262 = vmatpush.bf16.msra.mxu0 %v2929_v44  ;;  %v3802_v44 = vld [vmem:[%s5707_s1 + $0x7c4] sm:$0xf] }
 0x10f   :  { %2275 = vmatpush.bf16.msra.mxu1 %v3121_v46  ;;  %v2833_v46 = vor.u32 %v3658_v34, %v2830_v35  ;;  %v3409_v53 = vor.u32 %v3802_v44, %v3406_v45  ;;  %v3855_v44 = vld [vmem:[%s5708_s2] sm:$0x3f] }
 0x110   :  { %2288 = vmatpush.bf16.msra.mxu2 %v3313_v48  ;;  %v3025_v48 = vor.u32 %v3706_v36, %v3022_v40  ;;  %v396_v45 = vperm.slane %v3855_v44, 4 }
 0x111   :  { %2301 = vmatpush.bf16.msra.mxu3 %v3505_v59  ;;  %v3700_v59 = vld [vmem:[%s5707_s1 + $0x494] sm:$0xf] }
 0x112   :  { %2263 = vmatpush.bf16.msra.mxu0 %v2905_v61  ;;  %v2037_v58 = vpop.f32.mrf.mxu2  ;;  %v3382_v61 = vld [vmem:[%s5707_s1 + $0x7a8] sm:$0xf0] }
 0x113   :  { %2276 = vmatpush.bf16.msra.mxu1 %v3097_v0  ;;  %v2050_v62 = vpop.f32.mrf.mxu3  ;;  %v3001_v0 = vor.u32 %v3700_v59, %v2998_v54  ;;  %v3385_v2 = vor.u32 %v3796_v60, %v3382_v61 }
 0x114   :  { %2289 = vmatpush.bf16.msra.mxu2 %v3289_v1  ;;  %v3193_v1 = vor.u32 %v3748_v56, %v3190_v57  ;;  %v397_v57 = vperm.slane %v3855_v44, 5 }
 0x115   :  { %2302 = vmatpush.bf16.msra.mxu3 %v3481_v47 }
 0x116   :  { %2264 = vmatpush.bf16.msra.mxu0 %v2881_v13  ;;  %v2322_v13 = vperm.slane %v5439_v26, 2 }
 0x117   :  { %2277 = vmatpush.bf16.msra.mxu1 %v3073_v14 }
 0x118   :  { %2290 = vmatpush.bf16.msra.mxu2 %v3265_v15 }
 0x119   :  { %2303 = vmatpush.bf16.msra.mxu3 %v3457_v19 }
 0x11a   :  { %2265 = vmatpush.bf16.msra.mxu0 %v2857_v31 }
 0x11b   :  { %2278 = vmatpush.bf16.msra.mxu1 %v3049_v41 }
 0x11c   :  { %2291 = vmatpush.bf16.msra.mxu2 %v3241_v33 }
 0x11d   :  { %2304 = vmatpush.bf16.msra.mxu3 %v3433_v39 }
 0x11e   :  { %2266 = vmatpush.bf16.msra.mxu0 %v2833_v46 }
 0x11f   :  { %2279 = vmatpush.bf16.msra.mxu1 %v3025_v48 }
 0x120   :  { %2292 = vmatpush.bf16.msra.mxu2 %v3217_v51 }
 0x121   :  { %2305 = vmatpush.bf16.msra.mxu3 %v3409_v53 }
 0x122   :  { %2267 = vmatpush.bf16.msra.mxu0 %v2809_v63  ;;  %v2061_v3 = vpop.f32.mrf.mxu0 }
 0x123   :  { %2280 = vmatpush.bf16.msra.mxu1 %v3001_v0  ;;  %v2062_v4 = vadd.f32 %v2061_v3, %v2049_v37  ;;  %v2074_v47 = vpop.f32.mrf.mxu1 }
 0x124   :  { %2293 = vmatpush.bf16.msra.mxu2 %v3193_v1 }
 0x125   :  { %2306 = vmatpush.bf16.msra.mxu3 %v3385_v2  ;;  %2268 = vmatmul.bf16.vlgmr.msra.gmra.mxu0 %v4240_v50  ;;  %v2075_v5 = vadd.f32 %v2074_v47, %v2062_v4 }
 0x126   :  { %2281 = vmatmul.bf16.vlgmr.msra.gmra.mxu1 %v4244_v55 }
 0x127   :  { %2294 = vmatmul.bf16.vlgmr.msra.gmra.mxu2 %v4389_v6  ;;  %3847 = vtanh.f32 %v2075_v5 }
 0x128   :  { %2307 = vmatmul.bf16.vlgmr.msra.gmra.mxu3 %v4391_v7 }
 0x12a   :  { %v2087_v9 = vpop.f32.mrf.mxu2  ;;  %v2063_v12 = vpop.f32.mrf.mxu0 }
 0x12b   :  { %v2088_v10 = vadd.f32 %v2087_v9, %v395_v8  ;;  %v2100_v11 = vpop.f32.mrf.mxu3  ;;  %v2076_v50 = vpop.f32.mrf.mxu1 }
 0x12c   :  { %v2325_v50 = vperm.slane %v5439_v26, 5 }
 0x12d   :  { %v2101_v14 = vadd.f32 %v2100_v11, %v2088_v10  ;;  %v3848_v55 = vpop.eup %3847  ;;  %v2324_v11 = vperm.slane %v5439_v26, 4 }
 0x12e   :  { %v2334_v15 = vmul.f32 %v3848_v55, %v2322_v13 }
 0x130   :  { %v2339_v6 = vadd.f32 %v5524_v23, %v2334_v15 }
 0x132   :  { %v2089_v7 = vpop.f32.mrf.mxu2 }
 0x133   :  { %v2102_v16 = vpop.f32.mrf.mxu3 }
 0x142   :  { %v2113_v17 = vpop.f32.mrf.mxu0 }
 0x143   :  { %v2114_v18 = vadd.f32 %v2113_v17, %v2101_v14  ;;  %v2126_v19 = vpop.f32.mrf.mxu1  ;;  %v3842_v17 = vld [vmem:[#allocation2] ss:$0 sm:$0xff] }
 0x145   :  { %v2127_v20 = vadd.f32 %v2126_v19, %v2114_v18 }
 0x14a   :  { %v2139_v38 = vpop.f32.mrf.mxu2  ;;  %v2115_v25 = vpop.f32.mrf.mxu0 }
 0x14b   :  { %v2140_v21 = vadd.f32 %v2139_v38, %v2127_v20  ;;  %v2152_v22 = vpop.f32.mrf.mxu3  ;;  %v2128_v27 = vpop.f32.mrf.mxu1 }
 0x14d   :  { %v2153_v24 = vadd.f32 %v2152_v22, %v2140_v21 }
 0x14f   :  { %3849 = vtanh.f32 %v2153_v24 }
 0x152   :  { %v2141_v28 = vpop.f32.mrf.mxu2 }
 0x153   :  { %v2154_v30 = vpop.f32.mrf.mxu3 }
 0x155   :  { %v3850_v31 = vpop.eup %3849 }
 0x156   :  { %v2335_v32 = vmul.f32 %v3850_v31, %v2323_v29 }
 0x158   :  { %v2340_v23 = vadd.f32 %v2339_v6, %v2335_v32 }
 0x162   :  { %v2165_v41 = vpop.f32.mrf.mxu0 }
 0x163   :  { %v2178_v33 = vpop.f32.mrf.mxu1  ;;  %v2166_v52 = vadd.f32 %v2165_v41, %v396_v45 }
 0x165   :  { %v2179_v59 = vadd.f32 %v2178_v33, %v2166_v52 }
 0x16a   :  { %v2191_v34 = vpop.f32.mrf.mxu2  ;;  %v2167_v35 = vpop.f32.mrf.mxu0 }
 0x16b   :  { %v2204_v36 = vpop.f32.mrf.mxu3  ;;  %v2180_v37 = vpop.f32.mrf.mxu1  ;;  %v2192_v56 = vadd.f32 %v2191_v34, %v2179_v59 }
 0x16d   :  { %v2205_v58 = vadd.f32 %v2204_v36, %v2192_v56 }
 0x172   :  { %v2193_v39 = vpop.f32.mrf.mxu2 }
 0x173   :  { %v2206_v40 = vpop.f32.mrf.mxu3 }
 0x182   :  { %v2217_v42 = vpop.f32.mrf.mxu0 }
 0x183   :  { %v2230_v43 = vpop.f32.mrf.mxu1  ;;  %v2218_v61 = vadd.f32 %v2217_v42, %v2205_v58 }
 0x185   :  { %v2231_v1 = vadd.f32 %v2230_v43, %v2218_v61 }
 0x187   :  { %3851 = vtanh.f32 %v2231_v1 }
 0x18a   :  { %v2243_v46 = vpop.f32.mrf.mxu2  ;;  %v2219_v51 = vpop.f32.mrf.mxu0 }
 0x18b   :  { %v2256_v48 = vpop.f32.mrf.mxu3  ;;  %v2232_v49 = vpop.f32.mrf.mxu1  ;;  %v2244_v60 = vadd.f32 %v2243_v46, %v397_v57 }
 0x18d   :  { %v2257_v62 = vadd.f32 %v2256_v48, %v2244_v60  ;;  %v3852_v12 = vpop.eup %3851 }
 0x18e   :  { %v2336_v14 = vmul.f32 %v3852_v12, %v2324_v11 }
 0x190   :  { %v2341_v7 = vadd.f32 %v2340_v23, %v2336_v14 }
 0x192   :  { %v2245_v53 = vpop.f32.mrf.mxu2 }
 0x193   :  { %v2258_v54 = vpop.f32.mrf.mxu3 }
 0x1a2   :  { %v2269_v63 = vpop.f32.mrf.mxu0 }
 0x1a3   :  { %v2282_v0 = vpop.f32.mrf.mxu1  ;;  %v2270_v2 = vadd.f32 %v2269_v63, %v2257_v62 }
 0x1a5   :  { %v2283_v3 = vadd.f32 %v2282_v0, %v2270_v2 }
 0x1aa   :  { %v2295_v4 = vpop.f32.mrf.mxu2  ;;  %v2271_v8 = vpop.f32.mrf.mxu0 }
 0x1ab   :  { %v2296_v47 = vadd.f32 %v2295_v4, %v2283_v3  ;;  %v2308_v5 = vpop.f32.mrf.mxu3  ;;  %v2284_v9 = vpop.f32.mrf.mxu1 }
 0x1ad   :  { %v2309_v10 = vadd.f32 %v2308_v5, %v2296_v47 }
 0x1af   :  { %3853 = vtanh.f32 %v2309_v10 }
 0x1b2   :  { %v2297_v13 = vpop.f32.mrf.mxu2 }
 0x1b3   :  { %v2310_v55 = vpop.f32.mrf.mxu3 }
 0x1b5   :  { %v3854_v15 = vpop.eup %3853 }
 0x1b6   :  { %v2337_v6 = vmul.f32 %v3854_v15, %v2325_v50 }
 0x1b8   :  { %v2342_v16 = vadd.f32 %v2341_v7, %v2337_v6 }
 0x1ba   :  { %2343 = vadd.xlane.f32.xlu0 %v2342_v16 }
 0x22d   :  { %v2344_v18 = vpop.xlane.xlu0 %2343 }
 0x22e   :  { %v2349_v19 = vadd.f32 %v3842_v17, %v2344_v18 }
 0x230   :  { %2351 = vst.msk [vmem:[#allocation4] sm:$0xff] %vm2350_vm0, %v2349_v19 }
 0x237   :  { %v2370_v20 = vld [vmem:[#allocation4] sm:$0x3] }
 0x238   :  { %2371 = vst [vmem:[%s5711_s5] sm:$0x3] %v2370_v20 }

</bundles_post_ra>
